<compile_context>
chip_gen: v5e
topology: v5e:2x2
jax: 0.10.0
libtpu: 0.0.40
codegen_flags: <defaults>
</compile_context>

<pallas_src>
import functools

import jax
import jax.numpy as jnp
from jax import lax
from jax.experimental import pallas as pl
from jax.experimental.pallas import tpu as pltpu

_LANE = 128   # TPU lane width: channel dims are zero-padded to multiples of this
_CPAD = 8     # sublane-aligned zero-column margin in the depthwise scratch


def _round_up(v, m):
    return (v + m - 1) // m * m


def _fold_bn(gamma, beta, mean, var, eps=1e-5):
    scale = gamma / jnp.sqrt(var + eps)
    bias = beta - mean * scale
    return scale, bias


def _pad2d(a, rows, cols):
    return jnp.pad(a, ((0, rows - a.shape[0]), (0, cols - a.shape[1])))


def _inverted_residual_kernel(*refs, H, W, stride, use_res, has_expand):
    if has_expand:
        (x_ref, w1_ref, b1_ref, wdw_ref, b2_ref,
         w3_ref, b3_ref, o_ref, hpad_ref) = refs
    else:
        (x_ref, wdw_ref, b2_ref, w3_ref, b3_ref, o_ref, hpad_ref) = refs

    Cin = x_ref.shape[-1]
    Chid = wdw_ref.shape[-1]
    Cout = w3_ref.shape[-1]
    Wp = hpad_ref.shape[1]
    Ho = (H - 1) // stride + 1
    Wo = (W - 1) // stride + 1

    x = x_ref[0]                                    # (H, W, Cin), bf16
    x2d = x.reshape(H * W, Cin)

    # ---- 1x1 expand conv (MXU, bf16 in / f32 acc); BN scale pre-folded ----
    if has_expand:
        h = jnp.dot(x2d, w1_ref[...], preferred_element_type=jnp.float32)
        h = jnp.clip(h + b1_ref[...], 0.0, 6.0)     # folded BN bias + ReLU6
        h = h.reshape(H, W, Chid)
    else:
        h = x.astype(jnp.float32)

    # ---- 3x3 depthwise conv via a zero-bordered VMEM scratch ----
    # Re-zero only the border cells every step: the scratch persists across
    # grid steps and (under megacore "parallel" partitioning) each core starts
    # at an arbitrary program_id, so a program_id==0 init would be unsafe.
    zf = jnp.float32
    hpad_ref[0:1, :, :] = jnp.zeros((1, Wp, Chid), zf)
    hpad_ref[H + 1:H + 2, :, :] = jnp.zeros((1, Wp, Chid), zf)
    hpad_ref[1:H + 1, 0:_CPAD, :] = jnp.zeros((H, _CPAD, Chid), zf)
    hpad_ref[1:H + 1, _CPAD + W:Wp, :] = jnp.zeros((H, Wp - _CPAD - W, Chid), zf)
    hpad_ref[1:H + 1, _CPAD:_CPAD + W, :] = h       # sublane-aligned interior store

    w_taps = wdw_ref[...]                           # (9, Chid): read the ref once
    acc = None
    if stride == 1:
        for dy in range(3):
            for dx in range(3):
                win = hpad_ref[dy:dy + H, _CPAD - 1 + dx:_CPAD - 1 + dx + W, :]
                k = 3 * dy + dx
                term = win * w_taps[k:k + 1, :]
                acc = term if acc is None else acc + term   # first tap inits acc
    else:  # stride == 2: compute only the Ho x Wo outputs that are needed
        Hs, Ws = 2 * Ho - 1, 2 * Wo - 1
        for dy in range(3):
            for dx in range(3):
                win = hpad_ref[dy:dy + Hs, _CPAD - 1 + dx:_CPAD - 1 + dx + Ws, :]
                win = win[::2, ::2, :]
                k = 3 * dy + dx
                term = win * w_taps[k:k + 1, :]
                acc = term if acc is None else acc + term

    d = jnp.clip(acc + b2_ref[...], 0.0, 6.0)       # folded BN bias + ReLU6
    d2d = d.reshape(Ho * Wo, Chid).astype(jnp.bfloat16)

    # ---- 1x1 project conv (MXU); BN scale pre-folded into w3 ----
    out = jnp.dot(d2d, w3_ref[...], preferred_element_type=jnp.float32)
    out = out + b3_ref[...]
    if use_res:
        out = out + x2d.astype(jnp.float32)         # Adder(): residual add
    o_ref[0] = out.reshape(Ho, Wo, Cout).astype(o_ref.dtype)


def inverted_residual_nhwc(x, params, *, stride, expand_ratio):
    """Fused InvertedResidual on NHWC activations (preferred entry when chaining
    blocks: keep the whole network NHWC, transpose once at model entry/exit)."""
    assert stride in (1, 2)
    N, H, W, Cin = x.shape
    has_expand = expand_ratio != 1
    hidden = params["wdw"].shape[0]
    oup = params["w3"].shape[0]
    use_res = (stride == 1) and (Cin == oup)
    Ho = (H - 1) // stride + 1
    Wo = (W - 1) // stride + 1

    cin_p = _round_up(Cin, _LANE)
    chid_p = _round_up(hidden, _LANE)
    cout_p = _round_up(oup, _LANE)
    wp = W + 2 * _CPAD

    # ---- fold BN (inference) scales into the conv weights; keep only biases ----
    s2, b2 = _fold_bn(*params["bn2"])
    s3, b3 = _fold_bn(*params["bn3"])
    wdw = params["wdw"][:, 0].reshape(hidden, 9).T * s2[None, :]     # (9, hidden)
    w3m = params["w3"][:, :, 0, 0].T * s3[None, :]                   # (hidden, oup)

    # ---- zero-pad channels to full 128-lane width (lane-dense MXU / stores) ----
    x_p = jnp.pad(x, ((0, 0), (0, 0), (0, 0), (0, cin_p - Cin))).astype(jnp.bfloat16)

    operands = [x_p]
    in_specs = [pl.BlockSpec((1, H, W, cin_p), lambda n: (n, 0, 0, 0))]
    if has_expand:
        s1, b1 = _fold_bn(*params["bn1"])
        w1m = params["w1"][:, :, 0, 0].T * s1[None, :]               # (inp, hidden)
        operands += [_pad2d(w1m, cin_p, chid_p).astype(jnp.bfloat16),
                     _pad2d(b1[None, :], 1, chid_p).astype(jnp.float32)]
        in_specs += [pl.BlockSpec((cin_p, chid_p), lambda n: (0, 0)),
                     pl.BlockSpec((1, chid_p), lambda n: (0, 0))]
    operands += [_pad2d(wdw, 9, chid_p).astype(jnp.float32),
                 _pad2d(b2[None, :], 1, chid_p).astype(jnp.float32),
                 _pad2d(w3m, chid_p, cout_p).astype(jnp.bfloat16),
                 _pad2d(b3[None, :], 1, cout_p).astype(jnp.float32)]
    in_specs += [pl.BlockSpec((9, chid_p), lambda n: (0, 0)),
                 pl.BlockSpec((1, chid_p), lambda n: (0, 0)),
                 pl.BlockSpec((chid_p, cout_p), lambda n: (0, 0)),
                 pl.BlockSpec((1, cout_p), lambda n: (0, 0))]

    kernel = functools.partial(_inverted_residual_kernel, H=H, W=W, stride=stride,
                               use_res=use_res, has_expand=has_expand)

    # TODO(synk): for large early-layer resolutions (e.g. 112x112x96+) add a
    # row-chunk grid axis with a 1-row halo so per-step VMEM fits v7x's 64 MiB;
    # on v5e/v6e multiple images per step could be fused instead.
    out = pl.pallas_call(
        kernel,
        out_shape=jax.ShapeDtypeStruct((N, Ho, Wo, cout_p), jnp.float32),
        grid_spec=pltpu.PrefetchScalarGridSpec(
            num_scalar_prefetch=0,
            grid=(N,),
            in_specs=in_specs,
            out_specs=pl.BlockSpec((1, Ho, Wo, cout_p), lambda n: (n, 0, 0, 0)),
            scratch_shapes=[pltpu.VMEM((H + 2, wp, chid_p), jnp.float32)],
        ),
        compiler_params=pltpu.CompilerParams(
            dimension_semantics=("parallel",),      # batch axis -> megacore / 2 TCs
            vmem_limit_bytes=64 * 1024 * 1024,      # above the 16/32 MiB scoped default
        ),
    )(*operands)

    return out[..., :oup]


def inverted_residual(x_nchw, params, *, stride, expand_ratio):
    # NCHW convenience wrapper matching the PyTorch module interface. When
    # chaining blocks, call inverted_residual_nhwc directly: these transposes
    # round-trip the activation through HBM.
    x = jnp.transpose(x_nchw, (0, 2, 3, 1)).astype(jnp.float32)
    y = inverted_residual_nhwc(x, params, stride=stride, expand_ratio=expand_ratio)
    return jnp.transpose(y, (0, 3, 1, 2))


def make_params(key, inp, oup, expand_ratio):
    """Deterministic synthetic parameters in PyTorch layouts."""
    hidden = int(inp * expand_ratio)
    ks = jax.random.split(key, 6)

    def bn_stats(k, c):
        k1, k2, k3, k4 = jax.random.split(k, 4)
        gamma = 1.0 + 0.1 * jax.random.normal(k1, (c,), jnp.float32)
        beta = 0.1 * jax.random.normal(k2, (c,), jnp.float32)
        mean = 0.1 * jax.random.normal(k3, (c,), jnp.float32)
        var = 1.0 + 0.1 * jnp.abs(jax.random.normal(k4, (c,), jnp.float32))
        return (gamma, beta, mean, var)

    p = {}
    if expand_ratio != 1:
        p["w1"] = 0.2 * jax.random.normal(ks[0], (hidden, inp, 1, 1), jnp.float32)
        p["bn1"] = bn_stats(ks[1], hidden)
    p["wdw"] = 0.2 * jax.random.normal(ks[2], (hidden, 1, 3, 3), jnp.float32)
    p["bn2"] = bn_stats(ks[3], hidden)
    p["w3"] = 0.2 * jax.random.normal(ks[4], (oup, hidden, 1, 1), jnp.float32)
    p["bn3"] = bn_stats(ks[5], oup)
    return p


def ref_forward(x_nchw, params, *, stride, expand_ratio, eps=1e-5):
    """Pure-JAX (XLA, f32) reference of the same block, for correctness checking."""
    hi = lax.Precision.HIGHEST
    x = jnp.transpose(x_nchw, (0, 2, 3, 1)).astype(jnp.float32)

    def bn(v, stats):
        g, b, m, var = stats
        return (v - m) * (g / jnp.sqrt(var + eps)) + b

    h = x
    if expand_ratio != 1:
        h = jnp.einsum('nhwc,oc->nhwo', x, params["w1"][:, :, 0, 0], precision=hi)
        h = jnp.clip(bn(h, params["bn1"]), 0.0, 6.0)
    C = h.shape[-1]
    wd = jnp.transpose(params["wdw"][:, 0], (1, 2, 0))[:, :, None, :]   # (3,3,1,C) HWIO
    d = lax.conv_general_dilated(h, wd, (stride, stride), ((1, 1), (1, 1)),
                                 dimension_numbers=('NHWC', 'HWIO', 'NHWC'),
                                 feature_group_count=C, precision=hi)
    d = jnp.clip(bn(d, params["bn2"]), 0.0, 6.0)
    o = jnp.einsum('nhwc,oc->nhwo', d, params["w3"][:, :, 0, 0], precision=hi)
    o = bn(o, params["bn3"])
    if stride == 1 and x.shape[-1] == o.shape[-1]:
        o = o + x
    return jnp.transpose(o, (0, 3, 1, 2))


if __name__ == "__main__":
    key = jax.random.PRNGKey(0)
    N, H, W = 2, 16, 16
    cases = [
        # (inp, oup, stride, expand_ratio)
        (8, 8, 1, 4),    # stride 1, residual path
        (8, 16, 2, 4),   # stride 2, no residual
        (8, 8, 1, 1),    # expand_ratio == 1 (no expansion conv), residual
    ]
    for i, (inp, oup, stride, t) in enumerate(cases):
        kx, kp = jax.random.split(jax.random.fold_in(key, i))
        x = jax.random.normal(kx, (N, inp, H, W), jnp.float32)   # NCHW like PyTorch
        params = make_params(kp, inp, oup, t)

        out = inverted_residual(x, params, stride=stride, expand_ratio=t)
        out = jax.block_until_ready(out)

        ref = ref_forward(x, params, stride=stride, expand_ratio=t)
        assert out.shape == ref.shape, (i, out.shape, ref.shape)
        # bf16 MXU inputs vs. a pure-f32 reference -> loosened tolerances.
        max_err = float(jnp.max(jnp.abs(out - ref)))
        rms_err = float(jnp.sqrt(jnp.mean((out - ref) ** 2)))
        assert max_err < 1e-1, (i, max_err)
        assert rms_err < 2e-2, (i, rms_err)

    print("KERNEL_OK")
</pallas_src>

<mosaic_0001>
module attributes {stable_mosaic.version = 11 : i64} {
  func.func @_inverted_residual_kernel(%arg0: i32, %arg1: memref<1x16x16x128xbf16, #tpu.memory_space<vmem>>, %arg2: memref<128x128xbf16, #tpu.memory_space<vmem>>, %arg3: memref<1x128xf32, #tpu.memory_space<vmem>>, %arg4: memref<9x128xf32, #tpu.memory_space<vmem>>, %arg5: memref<1x128xf32, #tpu.memory_space<vmem>>, %arg6: memref<128x128xbf16, #tpu.memory_space<vmem>>, %arg7: memref<1x128xf32, #tpu.memory_space<vmem>>, %arg8: memref<1x16x16x128xf32, #tpu.memory_space<vmem>>, %arg9: memref<18x32x128xf32, #tpu.memory_space<vmem>>) attributes {dimension_semantics = [#tpu.dimension_semantics<parallel>], iteration_bounds = array<i64: 2>, scalar_prefetch = 0 : i64, scratch_operands = 1 : i64, tpu.core_type = #tpu.core_type<tc>, window_params = [{transform_indices = @transform_0, window_bounds = array<i64: 1, 16, 16, 128>}, {pipeline_mode = #tpu.pipeline_mode<synchronous>, transform_indices = @transform_1, window_bounds = array<i64: 128, 128>}, {pipeline_mode = #tpu.pipeline_mode<synchronous>, transform_indices = @transform_2, window_bounds = array<i64: 1, 128>}, {pipeline_mode = #tpu.pipeline_mode<synchronous>, transform_indices = @transform_3, window_bounds = array<i64: 9, 128>}, {pipeline_mode = #tpu.pipeline_mode<synchronous>, transform_indices = @transform_4, window_bounds = array<i64: 1, 128>}, {pipeline_mode = #tpu.pipeline_mode<synchronous>, transform_indices = @transform_5, window_bounds = array<i64: 128, 128>}, {pipeline_mode = #tpu.pipeline_mode<synchronous>, transform_indices = @transform_6, window_bounds = array<i64: 1, 128>}, {transform_indices = @transform_7, window_bounds = array<i64: 1, 16, 16, 128>}]} {
    %c0 = arith.constant 0 : index
    %c0_0 = arith.constant 0 : index
    %c0_1 = arith.constant 0 : index
    %c0_2 = arith.constant 0 : index
    %0 = vector.load %arg1[%c0, %c0_0, %c0_1, %c0_2] : memref<1x16x16x128xbf16, #tpu.memory_space<vmem>>, vector<1x16x16x128xbf16>
    %1 = vector.shape_cast %0 : vector<1x16x16x128xbf16> to vector<16x16x128xbf16>
    %2 = vector.shape_cast %1 : vector<16x16x128xbf16> to vector<256x128xbf16>
    %c0_3 = arith.constant 0 : index
    %c0_4 = arith.constant 0 : index
    %3 = vector.load %arg2[%c0_3, %c0_4] : memref<128x128xbf16, #tpu.memory_space<vmem>>, vector<128x128xbf16>
    %cst = arith.constant dense<0.000000e+00> : vector<256x128xf32>
    %4 = tpu.matmul %2, %3, %cst {dimension_numbers = #tpu.dot_dimension_numbers<[1], [0], [0], [1], [0, 0, 1, 1], [], []>} : vector<256x128xbf16>, vector<128x128xbf16>, vector<256x128xf32> -> vector<256x128xf32>
    %c0_5 = arith.constant 0 : index
    %c0_6 = arith.constant 0 : index
    %5 = vector.load %arg3[%c0_5, %c0_6] : memref<1x128xf32, #tpu.memory_space<vmem>>, vector<1x128xf32>
    %6 = vector.broadcast %5 : vector<1x128xf32> to vector<256x128xf32>
    %7 = arith.addf %4, %6 : vector<256x128xf32>
    %cst_7 = arith.constant 0.000000e+00 : f32
    %cst_8 = arith.constant 6.000000e+00 : f32
    %8 = vector.broadcast %cst_7 : f32 to vector<256x128xf32>
    %9 = arith.maximumf %8, %7 : vector<256x128xf32>
    %10 = vector.broadcast %cst_8 : f32 to vector<256x128xf32>
    %11 = arith.minimumf %10, %9 : vector<256x128xf32>
    %12 = vector.shape_cast %11 : vector<256x128xf32> to vector<16x16x128xf32>
    %cst_9 = arith.constant 0.000000e+00 : f32
    %13 = vector.broadcast %cst_9 : f32 to vector<1x32x128xf32>
    %c0_10 = arith.constant 0 : index
    %c0_11 = arith.constant 0 : index
    %c0_12 = arith.constant 0 : index
    %14 = vector.load %arg9[%c0_10, %c0_11, %c0_12] : memref<18x32x128xf32, #tpu.memory_space<vmem>>, vector<1x32x128xf32>
    tpu.vector_store %arg9[%c0_10, %c0_11, %c0_12], %13 {strides = array<i32>} : memref<18x32x128xf32, #tpu.memory_space<vmem>>, vector<1x32x128xf32>,
    %cst_13 = arith.constant 0.000000e+00 : f32
    %15 = vector.broadcast %cst_13 : f32 to vector<1x32x128xf32>
    %c17 = arith.constant 17 : index
    %c0_14 = arith.constant 0 : index
    %c0_15 = arith.constant 0 : index
    %16 = vector.load %arg9[%c17, %c0_14, %c0_15] : memref<18x32x128xf32, #tpu.memory_space<vmem>>, vector<1x32x128xf32>
    tpu.vector_store %arg9[%c17, %c0_14, %c0_15], %15 {strides = array<i32>} : memref<18x32x128xf32, #tpu.memory_space<vmem>>, vector<1x32x128xf32>,
    %cst_16 = arith.constant 0.000000e+00 : f32
    %17 = vector.broadcast %cst_16 : f32 to vector<16x8x128xf32>
    %c1 = arith.constant 1 : index
    %c0_17 = arith.constant 0 : index
    %c0_18 = arith.constant 0 : index
    %18 = vector.load %arg9[%c1, %c0_17, %c0_18] : memref<18x32x128xf32, #tpu.memory_space<vmem>>, vector<16x8x128xf32>
    tpu.vector_store %arg9[%c1, %c0_17, %c0_18], %17 {strides = array<i32>} : memref<18x32x128xf32, #tpu.memory_space<vmem>>, vector<16x8x128xf32>,
    %cst_19 = arith.constant 0.000000e+00 : f32
    %19 = vector.broadcast %cst_19 : f32 to vector<16x8x128xf32>
    %c1_20 = arith.constant 1 : index
    %c24 = arith.constant 24 : index
    %c0_21 = arith.constant 0 : index
    %20 = vector.load %arg9[%c1_20, %c24, %c0_21] : memref<18x32x128xf32, #tpu.memory_space<vmem>>, vector<16x8x128xf32>
    tpu.vector_store %arg9[%c1_20, %c24, %c0_21], %19 {strides = array<i32>} : memref<18x32x128xf32, #tpu.memory_space<vmem>>, vector<16x8x128xf32>,
    %c1_22 = arith.constant 1 : index
    %c8 = arith.constant 8 : index
    %c0_23 = arith.constant 0 : index
    %21 = vector.load %arg9[%c1_22, %c8, %c0_23] : memref<18x32x128xf32, #tpu.memory_space<vmem>>, vector<16x16x128xf32>
    tpu.vector_store %arg9[%c1_22, %c8, %c0_23], %12 {strides = array<i32>} : memref<18x32x128xf32, #tpu.memory_space<vmem>>, vector<16x16x128xf32>,
    %c0_24 = arith.constant 0 : index
    %c0_25 = arith.constant 0 : index
    %22 = vector.load %arg4[%c0_24, %c0_25] : memref<9x128xf32, #tpu.memory_space<vmem>>, vector<9x128xf32>
    %c0_26 = arith.constant 0 : index
    %c7 = arith.constant 7 : index
    %c0_27 = arith.constant 0 : index
    %23 = vector.load %arg9[%c0_26, %c7, %c0_27] : memref<18x32x128xf32, #tpu.memory_space<vmem>>, vector<16x16x128xf32>
    %24 = vector.extract_strided_slice %22 {offsets = [0, 0], sizes = [1, 128], strides = [1, 1]} : vector<9x128xf32> to vector<1x128xf32>
    %25 = vector.shape_cast %24 : vector<1x128xf32> to vector<1x1x128xf32>
    %26 = vector.broadcast %25 : vector<1x1x128xf32> to vector<16x16x128xf32>
    %27 = arith.mulf %23, %26 : vector<16x16x128xf32>
    %c0_28 = arith.constant 0 : index
    %c8_29 = arith.constant 8 : index
    %c0_30 = arith.constant 0 : index
    %28 = vector.load %arg9[%c0_28, %c8_29, %c0_30] : memref<18x32x128xf32, #tpu.memory_space<vmem>>, vector<16x16x128xf32>
    %29 = vector.extract_strided_slice %22 {offsets = [1, 0], sizes = [1, 128], strides = [1, 1]} : vector<9x128xf32> to vector<1x128xf32>
    %30 = vector.shape_cast %29 : vector<1x128xf32> to vector<1x1x128xf32>
    %31 = vector.broadcast %30 : vector<1x1x128xf32> to vector<16x16x128xf32>
    %32 = arith.mulf %28, %31 : vector<16x16x128xf32>
    %33 = arith.addf %27, %32 : vector<16x16x128xf32>
    %c0_31 = arith.constant 0 : index
    %c9 = arith.constant 9 : index
    %c0_32 = arith.constant 0 : index
    %34 = vector.load %arg9[%c0_31, %c9, %c0_32] : memref<18x32x128xf32, #tpu.memory_space<vmem>>, vector<16x16x128xf32>
    %35 = vector.extract_strided_slice %22 {offsets = [2, 0], sizes = [1, 128], strides = [1, 1]} : vector<9x128xf32> to vector<1x128xf32>
    %36 = vector.shape_cast %35 : vector<1x128xf32> to vector<1x1x128xf32>
    %37 = vector.broadcast %36 : vector<1x1x128xf32> to vector<16x16x128xf32>
    %38 = arith.mulf %34, %37 : vector<16x16x128xf32>
    %39 = arith.addf %33, %38 : vector<16x16x128xf32>
    %c1_33 = arith.constant 1 : index
    %c7_34 = arith.constant 7 : index
    %c0_35 = arith.constant 0 : index
    %40 = vector.load %arg9[%c1_33, %c7_34, %c0_35] : memref<18x32x128xf32, #tpu.memory_space<vmem>>, vector<16x16x128xf32>
    %41 = vector.extract_strided_slice %22 {offsets = [3, 0], sizes = [1, 128], strides = [1, 1]} : vector<9x128xf32> to vector<1x128xf32>
    %42 = vector.shape_cast %41 : vector<1x128xf32> to vector<1x1x128xf32>
    %43 = vector.broadcast %42 : vector<1x1x128xf32> to vector<16x16x128xf32>
    %44 = arith.mulf %40, %43 : vector<16x16x128xf32>
    %45 = arith.addf %39, %44 : vector<16x16x128xf32>
    %c1_36 = arith.constant 1 : index
    %c8_37 = arith.constant 8 : index
    %c0_38 = arith.constant 0 : index
    %46 = vector.load %arg9[%c1_36, %c8_37, %c0_38] : memref<18x32x128xf32, #tpu.memory_space<vmem>>, vector<16x16x128xf32>
    %47 = vector.extract_strided_slice %22 {offsets = [4, 0], sizes = [1, 128], strides = [1, 1]} : vector<9x128xf32> to vector<1x128xf32>
    %48 = vector.shape_cast %47 : vector<1x128xf32> to vector<1x1x128xf32>
    %49 = vector.broadcast %48 : vector<1x1x128xf32> to vector<16x16x128xf32>
    %50 = arith.mulf %46, %49 : vector<16x16x128xf32>
    %51 = arith.addf %45, %50 : vector<16x16x128xf32>
    %c1_39 = arith.constant 1 : index
    %c9_40 = arith.constant 9 : index
    %c0_41 = arith.constant 0 : index
    %52 = vector.load %arg9[%c1_39, %c9_40, %c0_41] : memref<18x32x128xf32, #tpu.memory_space<vmem>>, vector<16x16x128xf32>
    %53 = vector.extract_strided_slice %22 {offsets = [5, 0], sizes = [1, 128], strides = [1, 1]} : vector<9x128xf32> to vector<1x128xf32>
    %54 = vector.shape_cast %53 : vector<1x128xf32> to vector<1x1x128xf32>
    %55 = vector.broadcast %54 : vector<1x1x128xf32> to vector<16x16x128xf32>
    %56 = arith.mulf %52, %55 : vector<16x16x128xf32>
    %57 = arith.addf %51, %56 : vector<16x16x128xf32>
    %c2 = arith.constant 2 : index
    %c7_42 = arith.constant 7 : index
    %c0_43 = arith.constant 0 : index
    %58 = vector.load %arg9[%c2, %c7_42, %c0_43] : memref<18x32x128xf32, #tpu.memory_space<vmem>>, vector<16x16x128xf32>
    %59 = vector.extract_strided_slice %22 {offsets = [6, 0], sizes = [1, 128], strides = [1, 1]} : vector<9x128xf32> to vector<1x128xf32>
    %60 = vector.shape_cast %59 : vector<1x128xf32> to vector<1x1x128xf32>
    %61 = vector.broadcast %60 : vector<1x1x128xf32> to vector<16x16x128xf32>
    %62 = arith.mulf %58, %61 : vector<16x16x128xf32>
    %63 = arith.addf %57, %62 : vector<16x16x128xf32>
    %c2_44 = arith.constant 2 : index
    %c8_45 = arith.constant 8 : index
    %c0_46 = arith.constant 0 : index
    %64 = vector.load %arg9[%c2_44, %c8_45, %c0_46] : memref<18x32x128xf32, #tpu.memory_space<vmem>>, vector<16x16x128xf32>
    %65 = vector.extract_strided_slice %22 {offsets = [7, 0], sizes = [1, 128], strides = [1, 1]} : vector<9x128xf32> to vector<1x128xf32>
    %66 = vector.shape_cast %65 : vector<1x128xf32> to vector<1x1x128xf32>
    %67 = vector.broadcast %66 : vector<1x1x128xf32> to vector<16x16x128xf32>
    %68 = arith.mulf %64, %67 : vector<16x16x128xf32>
    %69 = arith.addf %63, %68 : vector<16x16x128xf32>
    %c2_47 = arith.constant 2 : index
    %c9_48 = arith.constant 9 : index
    %c0_49 = arith.constant 0 : index
    %70 = vector.load %arg9[%c2_47, %c9_48, %c0_49] : memref<18x32x128xf32, #tpu.memory_space<vmem>>, vector<16x16x128xf32>
    %71 = vector.extract_strided_slice %22 {offsets = [8, 0], sizes = [1, 128], strides = [1, 1]} : vector<9x128xf32> to vector<1x128xf32>
    %72 = vector.shape_cast %71 : vector<1x128xf32> to vector<1x1x128xf32>
    %73 = vector.broadcast %72 : vector<1x1x128xf32> to vector<16x16x128xf32>
    %74 = arith.mulf %70, %73 : vector<16x16x128xf32>
    %75 = arith.addf %69, %74 : vector<16x16x128xf32>
    %c0_50 = arith.constant 0 : index
    %c0_51 = arith.constant 0 : index
    %76 = vector.load %arg5[%c0_50, %c0_51] : memref<1x128xf32, #tpu.memory_space<vmem>>, vector<1x128xf32>
    %77 = vector.shape_cast %76 : vector<1x128xf32> to vector<1x1x128xf32>
    %78 = vector.broadcast %77 : vector<1x1x128xf32> to vector<16x16x128xf32>
    %79 = arith.addf %75, %78 : vector<16x16x128xf32>
    %cst_52 = arith.constant 0.000000e+00 : f32
    %cst_53 = arith.constant 6.000000e+00 : f32
    %80 = vector.broadcast %cst_52 : f32 to vector<16x16x128xf32>
    %81 = arith.maximumf %80, %79 : vector<16x16x128xf32>
    %82 = vector.broadcast %cst_53 : f32 to vector<16x16x128xf32>
    %83 = arith.minimumf %82, %81 : vector<16x16x128xf32>
    %84 = vector.shape_cast %83 : vector<16x16x128xf32> to vector<256x128xf32>
    %85 = arith.truncf %84 : vector<256x128xf32> to vector<256x128xbf16>
    %c0_54 = arith.constant 0 : index
    %c0_55 = arith.constant 0 : index
    %86 = vector.load %arg6[%c0_54, %c0_55] : memref<128x128xbf16, #tpu.memory_space<vmem>>, vector<128x128xbf16>
    %cst_56 = arith.constant dense<0.000000e+00> : vector<256x128xf32>
    %87 = tpu.matmul %85, %86, %cst_56 {dimension_numbers = #tpu.dot_dimension_numbers<[1], [0], [0], [1], [0, 0, 1, 1], [], []>} : vector<256x128xbf16>, vector<128x128xbf16>, vector<256x128xf32> -> vector<256x128xf32>
    %c0_57 = arith.constant 0 : index
    %c0_58 = arith.constant 0 : index
    %88 = vector.load %arg7[%c0_57, %c0_58] : memref<1x128xf32, #tpu.memory_space<vmem>>, vector<1x128xf32>
    %89 = vector.broadcast %88 : vector<1x128xf32> to vector<256x128xf32>
    %90 = arith.addf %87, %89 : vector<256x128xf32>
    %91 = arith.extf %2 : vector<256x128xbf16> to vector<256x128xf32>
    %92 = arith.addf %90, %91 : vector<256x128xf32>
    %93 = vector.shape_cast %92 : vector<256x128xf32> to vector<16x16x128xf32>
    %c0_59 = arith.constant 0 : index
    %c0_60 = arith.constant 0 : index
    %c0_61 = arith.constant 0 : index
    %c0_62 = arith.constant 0 : index
    %94 = vector.load %arg8[%c0_59, %c0_60, %c0_61, %c0_62] : memref<1x16x16x128xf32, #tpu.memory_space<vmem>>, vector<1x16x16x128xf32>
    %95 = vector.shape_cast %94 : vector<1x16x16x128xf32> to vector<16x16x128xf32>
    %96 = vector.shape_cast %93 : vector<16x16x128xf32> to vector<1x16x16x128xf32>
    tpu.vector_store %arg8[%c0_59, %c0_60, %c0_61, %c0_62], %96 {strides = array<i32>} : memref<1x16x16x128xf32, #tpu.memory_space<vmem>>, vector<1x16x16x128xf32>,
    return
  }
  func.func @transform_0(%arg0: i32) -> (i32, i32, i32, i32) {
    %c0_i32 = arith.constant 0 : i32
    %c0_i32_0 = arith.constant 0 : i32
    %c0_i32_1 = arith.constant 0 : i32
    %c0_i32_2 = arith.constant 0 : i32
    return %arg0, %c0_i32, %c0_i32_0, %c0_i32_1 : i32, i32, i32, i32
  }
  func.func @transform_1(%arg0: i32) -> (i32, i32) {
    %c0_i32 = arith.constant 0 : i32
    %c0_i32_0 = arith.constant 0 : i32
    %c0_i32_1 = arith.constant 0 : i32
    return %c0_i32, %c0_i32_0 : i32, i32
  }
  func.func @transform_2(%arg0: i32) -> (i32, i32) {
    %c0_i32 = arith.constant 0 : i32
    %c0_i32_0 = arith.constant 0 : i32
    %c0_i32_1 = arith.constant 0 : i32
    return %c0_i32, %c0_i32_0 : i32, i32
  }
  func.func @transform_3(%arg0: i32) -> (i32, i32) {
    %c0_i32 = arith.constant 0 : i32
    %c0_i32_0 = arith.constant 0 : i32
    %c0_i32_1 = arith.constant 0 : i32
    return %c0_i32, %c0_i32_0 : i32, i32
  }
  func.func @transform_4(%arg0: i32) -> (i32, i32) {
    %c0_i32 = arith.constant 0 : i32
    %c0_i32_0 = arith.constant 0 : i32
    %c0_i32_1 = arith.constant 0 : i32
    return %c0_i32, %c0_i32_0 : i32, i32
  }
  func.func @transform_5(%arg0: i32) -> (i32, i32) {
    %c0_i32 = arith.constant 0 : i32
    %c0_i32_0 = arith.constant 0 : i32
    %c0_i32_1 = arith.constant 0 : i32
    return %c0_i32, %c0_i32_0 : i32, i32
  }
  func.func @transform_6(%arg0: i32) -> (i32, i32) {
    %c0_i32 = arith.constant 0 : i32
    %c0_i32_0 = arith.constant 0 : i32
    %c0_i32_1 = arith.constant 0 : i32
    return %c0_i32, %c0_i32_0 : i32, i32
  }
  func.func @transform_7(%arg0: i32) -> (i32, i32, i32, i32) {
    %c0_i32 = arith.constant 0 : i32
    %c0_i32_0 = arith.constant 0 : i32
    %c0_i32_1 = arith.constant 0 : i32
    %c0_i32_2 = arith.constant 0 : i32
    return %arg0, %c0_i32, %c0_i32_0, %c0_i32_1 : i32, i32, i32, i32
  }
}

</mosaic_0001>

<bundles_post_ra>
// kernel: tpu_custom_call.1
= control target key start
LH: loop header
LB: loop body
LE: loop exit
PB: predicated region body
PF: predicated region fallthrough
CT: control target
= control target key end

     0   :  { %s3736_s0 = inlined_call_operand.hbm [shape: bf16[2,16,16,128], index: 0, kind: input, shape index: {}]   ;;  %s3737_s1 = inlined_call_operand.hbm [shape: bf16[128,128], index: 1, kind: input, shape index: {}]   ;;  %s3738_s2 = inlined_call_operand.vmem [shape: f32[1,128], index: 2, kind: input, shape index: {}]   ;;  %s3739_s3 = inlined_call_operand.hbm [shape: f32[9,128], index: 3, kind: input, shape index: {}]   ;;  %s3740_s4 = inlined_call_operand.vmem [shape: f32[1,128], index: 4, kind: input, shape index: {}]   ;;  %s3741_s5 = inlined_call_operand.hbm [shape: bf16[128,128], index: 5, kind: input, shape index: {}]   ;;  %s3742_s6 = inlined_call_operand.vmem [shape: f32[1,128], index: 6, kind: input, shape index: {}]   ;;  %s3743_s7 = inlined_call_operand.hbm [shape: f32[2,16,16,128], index: 7, kind: output, shape index: {}]  }
   0x1   :  { %3762 = sst [smem:[#allocation30_spill]] %s3737_s1 }
   0x2   :  { %12 = vsyncpa [#allocation4], 0 }
   0x3   :  { %14 = vsyncpa [#allocation4 + $0x1], 0 }
   0x4   :  { %15 = vsyncpa [#allocation7], 0 }
   0x5   :  { %16 = vsyncpa [#allocation10], 0 }
   0x6   :  { %17 = vsyncpa [#allocation5], 0 }
   0x7   :  { %19 = vsyncpa [#allocation5 + $0x1], 0  ;;  %s2639_s24 = smov 0   ;;  %s2641_s25 = smov 0  }
   0x8   :  { %s2643_s26 = smov 0   ;;  %s2645_s27 = smov 0  }
   0x9 LB: > { %s2660_s28 = sadd.s32 4294967295, %s2587_s27   ;;  %s2103_s29 = sadd.s32 4294967294, %s2587_s27   ;;  %s2587_s27 = sphi %s2645_s27, %s3804_s27   ;;  %s2583_s26 = sphi %s2643_s26, %s3803_s26   ;;  %s2579_s25 = sphi %s2641_s25, %s3802_s25   ;;  %s2575_s24 = sphi %s2639_s24, %s3801_s24  }
   0xa   : > { %p45_p0 = scmp.ne.s32.totalorder %s2579_s25, %s2575_s24  ;;  %p46_p1 = scmp.eq.s32.totalorder %s2660_s28, 0 }
   0xb   : > { %p195_p2 = scmp.eq.s32.totalorder %s2660_s28, 1  ;;  %p201_p3 = scmp.eq.s32.totalorder %s2103_s29, 1 }
   0xc   : > { %p2669_p4 = por %p46_p1, %p45_p0  ;;  %p2104_p5 = scmp.ge.s32.totalorder %s2587_s27, 1 }
   0xd   : > { %p2674_p6 = por %p201_p3, %p45_p0  ;;  %p208_p7 = scmp.lt.s32.totalorder %s2587_s27, 3 }
   0xe   : > { %s3765_s1 = sld [smem:[#allocation30_spill]]  ;;  %s2589_s13 = smov [#allocation6]  }
   0xf   : > { %p2682_p8 = pnand %p2104_p5, %p208_p7  ;;  %s221_s14 = sshll.u32 %s2589_s13, 4  ;;  %s222_s14 = int_to_ptr.vmem [resolvable:$true] %s221_s14 }
  0x10   : > { %s236_s18 = sshll.u32 %s3739_s3, 4  ;;  %s3744_s19 = smov 64   ;;  %s237_s18 = int_to_ptr.hbm [resolvable:$true] %s236_s18 }
  0x11   : > { %p2317_p9 = pneg %p2682_p8  ;;  %s3745_s20 = smov 4  }
  0x12   : > { %s2592_s21 = smov [#allocation8]   ;;  %s2593_s23 = smov 128  }
  0x13   : > { %p2690_p10 = pnand %p2317_p9, %p46_p1  ;;  %s238_s22 = sshll.u32 %s2592_s21, 4  ;;  %s239_s22 = int_to_ptr.vmem [resolvable:$true] %s238_s22 }
  0x14   : > { %s219_s11 = sshll.u32 %s3765_s1, 4  ;;  %s2594_s29 = smov 8   ;;  %s220_s11 = int_to_ptr.hbm [resolvable:$true] %s219_s11 }
  0x15   : > { %2320 = dma.hbm_to_vmem [thread:$0]  (!%p2690_p10), %s220_s11, 1024, %s222_s14, [#allocation7], %s3744_s19, %s3744_s19, %s3745_s20  }
  0x16   : > { %2323 = dma.hbm_to_vmem [thread:$0]  (!%p2690_p10), %s237_s18, 256, %s239_s22, [#allocation7], %s2593_s23, %s2593_s23, %s2594_s29  }
  0x17   : > { %s253_s13 = sshll.u32 %s3741_s5, 4  ;;  %s2595_s11 = smov [#allocation9]   ;;  %s254_s13 = int_to_ptr.hbm [resolvable:$true] %s253_s13 }
  0x18   : > { %s255_s14 = sshll.u32 %s2595_s11, 4  ;;  %s2714_s16 = sadd.s32 1, %s2587_s27   ;;  %s256_s14 = int_to_ptr.vmem [resolvable:$true] %s255_s14 }
  0x19   : > { %2326 = dma.hbm_to_vmem [thread:$0]  (!%p2690_p10), %s254_s13, 1024, %s256_s14, [#allocation10], %s3744_s19, %s3744_s19, %s3745_s20  }
  0x1a   : > { %s29_s17 = ssub.s32 %s2587_s27, %s2714_s16  ;;  %s32_s18 = sadd.s32 1, %s2583_s26 }
  0x1b   : > { %p30_p12 = scmp.eq.s32.totalorder %s29_s17, 0  ;;  %p39_p13 = scmp.ne.s32.totalorder %s2583_s26, %s2579_s25 }
  0x1c   : > { %p40_p0 = scmp.eq.s32.totalorder %s2587_s27, 0  ;;  %p2338_p5 = scmp.lt.s32.totalorder %s2587_s27, 2 }
  0x1d   : > { %s2723_s21 = scalar_select %p30_p12, %s2583_s26, %s32_s18  }
  0x1e   : > { %p2727_p3 = por %p195_p2, %p39_p13  ;;  %s272_s15 = sand.u32 1, %s2583_s26  }
  0x1f   : > { %s2251_s23 = sshll.u32 %s2587_s27, 7  ;;  %p41_p7 = por %p40_p0, %p39_p13 }
  0x20   : > { %s2109_s29 = sshll.u32 %s272_s15, 7  ;;  %s281_s13 = scalar_lea.hbm %s3736_s0, %s2251_s23 }
  0x21   : > { %s282_s11 = sshll.u32 %s281_s13, 4  ;;  %s276_s14 = scalar_lea.vmem [#allocation3], %s2109_s29  ;;  %s283_s11 = int_to_ptr.hbm [resolvable:$true] %s282_s11 }
  0x22   : > { %s284_s17 = sshll.u32 %s276_s14, 4  ;;  %p2737_p9 = pnand %p2338_p5, %p41_p7  ;;  %s285_s17 = int_to_ptr.vmem [resolvable:$true] %s284_s17 }
  0x23   : > { %s273_s19 = scalar_lea.sflag [#allocation4], %s272_s15  ;;  %s2483_s20 = sshra.s32 %s283_s11, 4  ;;  %s2484_s20 = int_to_ptr.hbm [resolvable:$true] %s2483_s20 }
  0x24   : > { %s2485_s1 = scalar_lea.hbm %s2484_s20, 128  ;;  %p2487_p10 = pneg %p2737_p9 }
  0x25   : > { %p2486_p2 = scmp.ne.s32.totalorder %s2484_s20, %s2485_s1  ;;  %s2490_s29 = scalar_lea.hbm %s3736_s0, 256 }
  0x26   : > { %p2491_p0 = scmp.lt.s32.totalorder %s2484_s20, %s3736_s0  ;;  %p2492_p5 = scmp.lt.s32.totalorder %s2490_s29, %s2485_s1 }
  0x27   : > { %p2488_p12 = pnand %p2487_p10, %p2486_p2 }
  0x28   : > { %p2493_p7 = por %p2492_p5, %p2491_p0 }
  0x29   : > { %p2489_p13 = pneg %p2488_p12 }
  0x2b   : > { %p2494_p11 = pnand %p2493_p7, %p2489_p13 }
  0x2d   : > { %2497 = shalt.err (!%p2494_p11)
}
  0x2e   : > { %s3770_s15 = smov 4   ;;  %s3771_s14 = smov 64  }
  0x2f   : > { %2330 = dma.hbm_to_vmem [thread:$0]  (!%p2737_p9), %s283_s11, 2048, %s285_s17, %s273_s19, %s3771_s14, %s3771_s14, %s3770_s15  }
  0x30   : > { %296 = sbr.rel (%p2682_p8) target bundleno = 639 (0x27f), region = 48 }
  0x35   : > { %s2757_s23 = sand.u32 1, %s2579_s25  }
  0x36   : > { %s2113_s20 = sshll.u32 %s2757_s23, 7  ;;  %s299_s1 = scalar_lea.sflag [#allocation4], %s2757_s23 }
  0x37   : > { %s2761_s9 = scalar_lea.vmem [#allocation3], %s2113_s20 }
  0x38   : > { %2558 = dma.done.wait (%p2669_p4), %s299_s1, 2048  }
  0x39   : > { %2560 = vsyncadd (%p2669_p4), %s299_s1, 4294965248 }
  0x3a   : > { %2562 = dma.done.wait (%p46_p1), [#allocation7], 1280  }
  0x3b   : > { %2564 = vsyncadd (%p46_p1), [#allocation7], 4294966016 }
  0x3c   : > { %2566 = dma.done.wait (%p46_p1), [#allocation10], 1024  }
  0x3d   : > { %2568 = vsyncadd (%p46_p1), [#allocation10], 4294966272  ;;  %v2275_v0 = vld [vmem:[#allocation6 + $0x38] sm:$0xff]  ;;  %v2274_v1 = vld [vmem:[#allocation6 + $0x30] sm:$0xff]  ;;  %v2596_v20 = vmov 0.0   ;;  %s2117_s14 = sshll.u32 %s2757_s23, 8 }
  0x3e   : > { %545 = vmatpush.bf16.msra.mxu0 %v2275_v0  ;;  %2285 = vmatpush.bf16.msra.mxu2 %v2275_v0  ;;  %v2273_v2 = vld [vmem:[#allocation6 + $0x28] sm:$0xff]  ;;  %v2272_v3 = vld [vmem:[#allocation6 + $0x20] sm:$0xff]  ;;  %v2271_v4 = vld [vmem:[#allocation6 + $0x18] sm:$0xff]  ;;  %698 = vst [vmem:[#allocation2] sm:$0xff] %v2596_v20  ;;  %s3464_s20 = scalar_lea.vmem [#allocation11], %s2117_s14  ;;  %s2284_s1 = sshll.u32 %s2660_s28, 8 }
  0x3f   : > { %v2270_v5 = vld [vmem:[#allocation6 + $0x10] sm:$0xff]  ;;  %v2269_v6 = vld [vmem:[#allocation6 + $0x8] sm:$0xff]  ;;  %v2268_v7 = vld [vmem:[#allocation6] sm:$0xff]  ;;  %699 = vst [vmem:[#allocation2 + $0x8] sm:$0xff] %v2596_v20  ;;  %s1997_s19 = scalar_lea.hbm %s3743_s7, %s2284_s1  ;;  %s1998_s11 = sshll.u32 %s3464_s20, 4  ;;  %s1999_s11 = int_to_ptr.vmem [resolvable:$true] %s1998_s11 }
  0x40   : > { %v2252_v8 = vld [vmem:[%s2761_s9] sm:$0xff]  ;;  %v2253_v9 = vld [vmem:[%s2761_s9 + $0x8] sm:$0xff]  ;;  %v2254_v10 = vld [vmem:[%s2761_s9 + $0x10] sm:$0xff]  ;;  %700 = vst [vmem:[#allocation2 + $0x10] sm:$0xff] %v2596_v20  ;;  %s2000_s17 = sshll.u32 %s1997_s19, 4  ;;  %s2533_s13 = scalar_lea.hbm %s3743_s7, 512  ;;  %s2001_s17 = int_to_ptr.hbm [resolvable:$true] %s2000_s17 }
  0x41   : > { %v2260_v11 = vld [vmem:[%s2761_s9 + $0x40] sm:$0xff]  ;;  %v2255_v12 = vld [vmem:[%s2761_s9 + $0x18] sm:$0xff]  ;;  %v2261_v13 = vld [vmem:[%s2761_s9 + $0x48] sm:$0xff]  ;;  %701 = vst [vmem:[#allocation2 + $0x18] sm:$0xff] %v2596_v20  ;;  %s2527_s18 = sshra.s32 %s2001_s17, 4  ;;  %s2528_s18 = int_to_ptr.hbm [resolvable:$true] %s2527_s18 }
  0x42   : > { %546 = vmatpush.bf16.msra.mxu0 %v2274_v1  ;;  %2286 = vmatpush.bf16.msra.mxu2 %v2274_v1  ;;  %v2256_v14 = vld [vmem:[%s2761_s9 + $0x20] sm:$0xff]  ;;  %v2262_v15 = vld [vmem:[%s2761_s9 + $0x50] sm:$0xff]  ;;  %v2257_v16 = vld [vmem:[%s2761_s9 + $0x28] sm:$0xff]  ;;  %708 = vst [vmem:[#allocation2 + $0x20] sm:$0xff] %v2596_v20  ;;  %s2529_s28 = scalar_lea.hbm %s2528_s18, 256  ;;  %p2534_p11 = scmp.lt.s32.totalorder %s2528_s18, %s3743_s7 }
  0x43   : > { %v2263_v17 = vld [vmem:[%s2761_s9 + $0x58] sm:$0xff]  ;;  %v2258_v18 = vld [vmem:[%s2761_s9 + $0x30] sm:$0xff]  ;;  %v2264_v19 = vld [vmem:[%s2761_s9 + $0x60] sm:$0xff]  ;;  %709 = vst [vmem:[#allocation2 + $0x40] sm:$0xff] %v2596_v20  ;;  %p2530_p1 = scmp.ne.s32.totalorder %s2528_s18, %s2529_s28  ;;  %p2535_p9 = scmp.lt.s32.totalorder %s2533_s13, %s2529_s28 }
  0x44   : > { %724 = vst [vmem:[#allocation2 + $0x38] sm:$0xff] %v2596_v20  ;;  %v2259_v21 = vld [vmem:[%s2761_s9 + $0x38] sm:$0xff]  ;;  %v2265_v22 = vld [vmem:[%s2761_s9 + $0x68] sm:$0xff]  ;;  %v2282_v24 = vld [vmem:[#allocation9 + $0x30] sm:$0xff] }
  0x45   : > { %725 = vst [vmem:[#allocation2 + $0x58] sm:$0xff] %v2596_v20  ;;  %v2283_v23 = vld [vmem:[#allocation9 + $0x38] sm:$0xff]  ;;  %v2818_v25 = vld [vmem:[%s3738_s2] ss:$0 sm:$0xff]  ;;  %v2281_v26 = vld [vmem:[#allocation9 + $0x28] sm:$0xff]  ;;  %p2531_p4 = pnand %p2530_p1, %p2727_p3  ;;  %p2536_p2 = por %p2535_p9, %p2534_p11 }
  0x46   : > { %547 = vmatpush.bf16.msra.mxu0 %v2273_v2  ;;  %2287 = vmatpush.bf16.msra.mxu2 %v2273_v2  ;;  %703 = vst [vmem:[#allocation2 + $0x220] sm:$0xff] %v2596_v20  ;;  %v2266_v27 = vld [vmem:[%s2761_s9 + $0x70] sm:$0xff]  ;;  %v2279_v33 = vld [vmem:[#allocation9 + $0x18] sm:$0xff]  ;;  %v2278_v36 = vld [vmem:[#allocation9 + $0x10] sm:$0xff] }
  0x47   : > { %704 = vst [vmem:[#allocation2 + $0x228] sm:$0xff] %v2596_v20  ;;  %1800 = vmatpush.bf16.msra.mxu1 %v2283_v23  ;;  %2293 = vmatpush.bf16.msra.mxu3 %v2283_v23  ;;  %v2280_v30 = vld [vmem:[#allocation9 + $0x20] sm:$0xff]  ;;  %v772_v37 = vld [vmem:[#allocation8] sm:$0xff]  ;;  %v2277_v43 = vld [vmem:[#allocation9 + $0x8] sm:$0xff]  ;;  %p2532_p8 = pneg %p2531_p4 }
  0x48   : > { %705 = vst [vmem:[#allocation2 + $0x230] sm:$0xff] %v2596_v20  ;;  %v2839_v39 = vperm.slane %v772_v37, 0  ;;  %v774_v40 = vld [vmem:[#allocation2 + $0x7] sm:$0xff]  ;;  %v2844_v42 = vperm.slane %v772_v37, 1  ;;  %v2267_v44 = vld [vmem:[%s2761_s9 + $0x78] sm:$0xff]  ;;  %v775_v45 = vld [vmem:[#allocation2 + $0xf] sm:$0xff] }
  0x49   : > { %706 = vst [vmem:[#allocation2 + $0x238] sm:$0xff] %v2596_v20  ;;  %v2850_v48 = vperm.slane %v772_v37, 2  ;;  %v936_v50 = vld [vmem:[#allocation2 + $0x9] sm:$0xff]  ;;  %v937_v56 = vld [vmem:[#allocation2 + $0x11] sm:$0xff]  ;;  %v2855_v58 = vperm.slane %v772_v37, 3  ;;  %v2883_v23 = vperm.slane %v772_v37, 7  ;;  %p2537_p10 = pnand %p2536_p2, %p2532_p8 }
  0x4a   : > { %548 = vmatpush.bf16.msra.mxu0 %v2272_v3  ;;  %2288 = vmatpush.bf16.msra.mxu2 %v2272_v3  ;;  %710 = vst [vmem:[#allocation2 + $0x60] sm:$0xff] %v2596_v20  ;;  %v807_v46 = vmul.f32 %v2839_v39, %v774_v40  ;;  %v872_v47 = vmul.f32 0.0, %v2844_v42  ;;  %v2276_v52 = vld [vmem:[#allocation9] sm:$0xff]  ;;  %v808_v53 = vmul.f32 %v2839_v39, %v775_v45 }
  0x4b   : > { %711 = vst [vmem:[#allocation2 + $0x80] sm:$0xff] %v2596_v20  ;;  %1801 = vmatpush.bf16.msra.mxu1 %v2282_v24  ;;  %2294 = vmatpush.bf16.msra.mxu3 %v2282_v24  ;;  %v969_v57 = vmul.f32 %v2850_v48, %v936_v50  ;;  %v970_v62 = vmul.f32 %v2850_v48, %v937_v56 }
  0x4c   : > { %712 = vst [vmem:[#allocation2 + $0xa0] sm:$0xff] %v2596_v20  ;;  %v904_v55 = vadd.f32 %v872_v47, %v807_v46  ;;  %v905_v61 = vadd.f32 %v872_v47, %v808_v53 }
  0x4d   : > { %713 = vst [vmem:[#allocation2 + $0xc0] sm:$0xff] %v2596_v20 }
  0x4e   : > { %549 = vmatpush.bf16.msra.mxu0 %v2271_v4  ;;  %2289 = vmatpush.bf16.msra.mxu2 %v2271_v4  ;;  %714 = vst [vmem:[#allocation2 + $0xe0] sm:$0xff] %v2596_v20  ;;  %v1001_v63 = vadd.f32 %v969_v57, %v904_v55  ;;  %v2863_v4 = vperm.slane %v772_v37, 4 }
  0x4f   : > { %715 = vst [vmem:[#allocation2 + $0x100] sm:$0xff] %v2596_v20  ;;  %1802 = vmatpush.bf16.msra.mxu1 %v2281_v26  ;;  %2295 = vmatpush.bf16.msra.mxu3 %v2281_v26 }
  0x50   : > { %716 = vst [vmem:[#allocation2 + $0x120] sm:$0xff] %v2596_v20 }
  0x51   : > { %717 = vst [vmem:[#allocation2 + $0x140] sm:$0xff] %v2596_v20 }
  0x52   : > { %550 = vmatpush.bf16.msra.mxu0 %v2270_v5  ;;  %2290 = vmatpush.bf16.msra.mxu2 %v2270_v5  ;;  %718 = vst [vmem:[#allocation2 + $0x160] sm:$0xff] %v2596_v20  ;;  %v2865_v5 = vperm.slane %v772_v37, 5 }
  0x53   : > { %719 = vst [vmem:[#allocation2 + $0x180] sm:$0xff] %v2596_v20  ;;  %1803 = vmatpush.bf16.msra.mxu1 %v2280_v30  ;;  %2296 = vmatpush.bf16.msra.mxu3 %v2280_v30  ;;  %v2886_v30 = vld [vmem:[#allocation8 + $0x8] ss:$0 sm:$0xff] }
  0x54   : > { %720 = vst [vmem:[#allocation2 + $0x1a0] sm:$0xff] %v2596_v20 }
  0x55   : > { %721 = vst [vmem:[#allocation2 + $0x1c0] sm:$0xff] %v2596_v20 }
  0x56   : > { %551 = vmatpush.bf16.msra.mxu0 %v2269_v6  ;;  %2291 = vmatpush.bf16.msra.mxu2 %v2269_v6  ;;  %722 = vst [vmem:[#allocation2 + $0x1e0] sm:$0xff] %v2596_v20  ;;  %v1002_v6 = vadd.f32 %v970_v62, %v905_v61 }
  0x57   : > { %723 = vst [vmem:[#allocation2 + $0x200] sm:$0xff] %v2596_v20  ;;  %1804 = vmatpush.bf16.msra.mxu1 %v2279_v33  ;;  %2297 = vmatpush.bf16.msra.mxu3 %v2279_v33 }
  0x58   : > { %726 = vst [vmem:[#allocation2 + $0x78] sm:$0xff] %v2596_v20 }
  0x59   : > { %727 = vst [vmem:[#allocation2 + $0x98] sm:$0xff] %v2596_v20 }
  0x5a   : > { %552 = vmatpush.bf16.msra.mxu0 %v2268_v7  ;;  %2292 = vmatpush.bf16.msra.mxu2 %v2268_v7  ;;  %728 = vst [vmem:[#allocation2 + $0xb8] sm:$0xff] %v2596_v20 }
  0x5b   : > { %729 = vst [vmem:[#allocation2 + $0xd8] sm:$0xff] %v2596_v20  ;;  %1805 = vmatpush.bf16.msra.mxu1 %v2278_v36  ;;  %2298 = vmatpush.bf16.msra.mxu3 %v2278_v36 }
  0x5c   : > { %730 = vst [vmem:[#allocation2 + $0xf8] sm:$0xff] %v2596_v20 }
  0x5d   : > { %553 = vmatmul.bf16.vlgmr.msra.gmra.mxu0 %v2252_v8  ;;  %593 = vmatmul.bf16.vlgmr.msra.gmra.mxu2 %v2260_v11  ;;  %731 = vst [vmem:[#allocation2 + $0x118] sm:$0xff] %v2596_v20  ;;  %v2868_v11 = vperm.slane %v772_v37, 6 }
  0x5e   : > { %732 = vst [vmem:[#allocation2 + $0x138] sm:$0xff] %v2596_v20 }
  0x5f   : > { %733 = vst [vmem:[#allocation2 + $0x158] sm:$0xff] %v2596_v20  ;;  %1806 = vmatpush.bf16.msra.mxu1 %v2277_v43  ;;  %2299 = vmatpush.bf16.msra.mxu3 %v2277_v43 }
  0x60   : > { %734 = vst [vmem:[#allocation2 + $0x178] sm:$0xff] %v2596_v20 }
  0x61   : > { %735 = vst [vmem:[#allocation2 + $0x198] sm:$0xff] %v2596_v20 }
  0x62   : > { %736 = vst [vmem:[#allocation2 + $0x1b8] sm:$0xff] %v2596_v20 }
  0x63   : > { %737 = vst [vmem:[#allocation2 + $0x1d8] sm:$0xff] %v2596_v20  ;;  %1807 = vmatpush.bf16.msra.mxu1 %v2276_v52  ;;  %2300 = vmatpush.bf16.msra.mxu3 %v2276_v52 }
  0x64   : > { %738 = vst [vmem:[#allocation2 + $0x1f8] sm:$0xff] %v2596_v20 }
  0x65   : > { %739 = vst [vmem:[#allocation2 + $0x218] sm:$0xff] %v2596_v20 }
  0x6d   : > { %558 = vmatmul.bf16.gmra.mxu0 %v2253_v9  ;;  %598 = vmatmul.bf16.gmra.mxu2 %v2261_v13 }
  0x7d   : > { %563 = vmatmul.bf16.gmra.mxu0 %v2254_v10  ;;  %603 = vmatmul.bf16.gmra.mxu2 %v2262_v15 }
  0x8d   : > { %568 = vmatmul.bf16.gmra.mxu0 %v2255_v12  ;;  %608 = vmatmul.bf16.gmra.mxu2 %v2263_v17 }
  0x9d   : > { %573 = vmatmul.bf16.gmra.mxu0 %v2256_v14  ;;  %613 = vmatmul.bf16.gmra.mxu2 %v2264_v19 }
  0xad   : > { %578 = vmatmul.bf16.gmra.mxu0 %v2257_v16  ;;  %618 = vmatmul.bf16.gmra.mxu2 %v2265_v22 }
  0xbd   : > { %583 = vmatmul.bf16.gmra.mxu0 %v2258_v18  ;;  %623 = vmatmul.bf16.gmra.mxu2 %v2266_v27 }
  0xcd   : > { %588 = vmatmul.bf16.gmra.mxu0 %v2259_v21  ;;  %628 = vmatmul.bf16.gmra.mxu2 %v2267_v44 }
  0xda   : > { %v554_v28 = vpop.f32.mrf.mxu0 }
  0xdb   : > { %v555_v29 = vadd.f32 %v2818_v25, %v554_v28 }
  0xdd   : > { %v634_v31 = vmax.f32 %v555_v29, 0.0 }
  0xdf   : > { %v2830_v32 = vmin.f32 %v634_v31, 6.0 }
  0xe1   : > { %740 = vst [vmem:[#allocation2 + $0x28] sm:$0xff] %v2830_v32  ;;  %v1163_v13 = vmul.f32 %v2863_v4, %v2830_v32  ;;  %v874_v33 = vmul.f32 %v2844_v42, %v2830_v32 }
  0xe2   : > { %v556_v34 = vpop.f32.mrf.mxu0 }
  0xe3   : > { %v557_v35 = vadd.f32 %v2818_v25, %v556_v34 }
  0xe5   : > { %v635_v38 = vmax.f32 %v557_v35, 0.0 }
  0xe7   : > { %v2842_v41 = vmin.f32 %v635_v38, 6.0  ;;  %v594_v38 = vpop.f32.mrf.mxu2 }
  0xe8   : > { %v1033_v59 = vld [vmem:[#allocation2 + $0x27] sm:$0xff] }
  0xe9   : > { %741 = vst [vmem:[#allocation2 + $0x30] sm:$0xff] %v2842_v41  ;;  %v1066_v0 = vmul.f32 %v2855_v58, %v1033_v59  ;;  %v1164_v21 = vmul.f32 %v2863_v4, %v2842_v41  ;;  %v809_v26 = vmul.f32 %v1033_v59, %v2839_v39  ;;  %v875_v44 = vmul.f32 %v2844_v42, %v2842_v41 }
  0xea   : > { %v559_v49 = vpop.f32.mrf.mxu0 }
  0xeb   : > { %v560_v51 = vadd.f32 %v2818_v25, %v559_v49  ;;  %v1098_v10 = vadd.f32 %v1066_v0, %v1001_v63  ;;  %v906_v45 = vadd.f32 %v874_v33, %v809_v26 }
  0xed   : > { %v636_v54 = vmax.f32 %v560_v51, 0.0  ;;  %v1195_v17 = vadd.f32 %v1163_v13, %v1098_v10  ;;  %v2907_v51 = vld [vmem:[%s3740_s4] ss:$0 sm:$0xff] }
  0xef   : > { %v2857_v60 = vmin.f32 %v636_v54, 6.0 }
  0xf0   : > { %v1034_v2 = vld [vmem:[#allocation2 + $0x2f] sm:$0xff] }
  0xf1   : > { %742 = vst [vmem:[#allocation2 + $0x48] sm:$0xff] %v2857_v60  ;;  %v1227_v7 = vld [vmem:[#allocation2 + $0x29] sm:$0xff]  ;;  %v1067_v9 = vmul.f32 %v2855_v58, %v1034_v2  ;;  %v1228_v24 = vld [vmem:[#allocation2 + $0x31] sm:$0xff]  ;;  %v810_v31 = vmul.f32 %v1034_v2, %v2839_v39  ;;  %v1455_v37 = vmul.f32 %v2883_v23, %v2857_v60 }
  0xf2   : > { %v561_v1 = vpop.f32.mrf.mxu0  ;;  %v1260_v14 = vmul.f32 %v2865_v5, %v1227_v7  ;;  %v971_v34 = vmul.f32 %v1227_v7, %v2850_v48  ;;  %v1261_v36 = vmul.f32 %v2865_v5, %v1228_v24  ;;  %v972_v61 = vmul.f32 %v1228_v24, %v2850_v48 }
  0xf3   : > { %v562_v3 = vadd.f32 %v2818_v25, %v561_v1  ;;  %v1099_v16 = vadd.f32 %v1067_v9, %v1002_v6  ;;  %v907_v41 = vadd.f32 %v875_v44, %v810_v31  ;;  %v1165_v9 = vmul.f32 %v2863_v4, %v2857_v60 }
  0xf4   : > { %v1292_v22 = vadd.f32 %v1260_v14, %v1195_v17  ;;  %v1003_v54 = vadd.f32 %v971_v34, %v906_v45  ;;  %v595_v24 = vadd.f32 %v2818_v25, %v594_v38  ;;  %v876_v34 = vmul.f32 %v2844_v42, %v2857_v60 }
  0xf5   : > { %v637_v8 = vmax.f32 %v562_v3, 0.0  ;;  %v1196_v28 = vadd.f32 %v1164_v21, %v1099_v16  ;;  %v1004_v6 = vadd.f32 %v972_v61, %v907_v41 }
  0xf6   : > { %v650_v31 = vmax.f32 %v595_v24, 0.0 }
  0xf7   : > { %v2870_v12 = vmin.f32 %v637_v8, 6.0  ;;  %v1293_v32 = vadd.f32 %v1261_v36, %v1196_v28 }
  0xf8   : > { %v2875_v15 = vld [vmem:[#allocation2 + $0x47] sm:$0xff]  ;;  %v2940_v38 = vmin.f32 %v650_v31, 6.0 }
  0xf9   : > { %743 = vst [vmem:[#allocation2 + $0x50] sm:$0xff] %v2870_v12  ;;  %v1358_v18 = vmul.f32 %v2868_v11, %v2875_v15  ;;  %v1068_v46 = vmul.f32 %v2875_v15, %v2855_v58  ;;  %v1456_v57 = vmul.f32 %v2883_v23, %v2870_v12  ;;  %v811_v33 = vmul.f32 %v2875_v15, %v2839_v39 }
  0xfa   : > { %v564_v19 = vpop.f32.mrf.mxu0  ;;  %756 = vst [vmem:[#allocation2 + $0x128] sm:$0xff] %v2940_v38 }
  0xfb   : > { %v565_v20 = vadd.f32 %v2818_v25, %v564_v19  ;;  %v1390_v29 = vadd.f32 %v1358_v18, %v1292_v22  ;;  %v1100_v63 = vadd.f32 %v1068_v46, %v1003_v54  ;;  %v1166_v22 = vmul.f32 %v2863_v4, %v2870_v12 }
  0xfc   : > { %v877_v54 = vmul.f32 %v2844_v42, %v2870_v12 }
  0xfd   : > { %v638_v27 = vmax.f32 %v565_v20, 0.0  ;;  %v1487_v49 = vadd.f32 %v1455_v37, %v1390_v29  ;;  %v1197_v18 = vadd.f32 %v1165_v9, %v1100_v63  ;;  %v596_v20 = vpop.f32.mrf.mxu2 }
  0xff   : > { %v2892_v35 = vmin.f32 %v638_v27, 6.0 }
 0x100   : > { %v1326_v40 = vld [vmem:[#allocation2 + $0x4f] sm:$0xff] }
 0x101   : > { %v1519_v43 = vld [vmem:[#allocation2 + $0x49] sm:$0xff]  ;;  %744 = vst [vmem:[#allocation2 + $0x68] sm:$0xff] %v2892_v35  ;;  %v1359_v47 = vmul.f32 %v2868_v11, %v1326_v40  ;;  %v2909_v53 = vld [vmem:[#allocation2 + $0x51] sm:$0xff]  ;;  %v1069_v62 = vmul.f32 %v1326_v40, %v2855_v58  ;;  %v1457_v15 = vmul.f32 %v2883_v23, %v2892_v35 }
 0x102   : > { %v1552_v50 = vmul.f32 %v2886_v30, %v1519_v43  ;;  %v566_v52 = vpop.f32.mrf.mxu0  ;;  %v1553_v2 = vmul.f32 %v2886_v30, %v2909_v53  ;;  %v1262_v10 = vmul.f32 %v1519_v43, %v2865_v5  ;;  %v1263_v46 = vmul.f32 %v2909_v53, %v2865_v5 }
 0x103   : > { %v567_v55 = vadd.f32 %v2818_v25, %v566_v52  ;;  %v1391_v56 = vadd.f32 %v1359_v47, %v1293_v32  ;;  %v1101_v13 = vadd.f32 %v1069_v62, %v1004_v6  ;;  %v812_v32 = vmul.f32 %v1326_v40, %v2839_v39 }
 0x104   : > { %v1584_v59 = vadd.f32 %v1552_v50, %v1487_v49  ;;  %v1294_v28 = vadd.f32 %v1262_v10, %v1197_v18  ;;  %v973_v47 = vmul.f32 %v1519_v43, %v2850_v48  ;;  %v597_v62 = vadd.f32 %v2818_v25, %v596_v20 }
 0x105   : > { %v639_v0 = vmax.f32 %v567_v55, 0.0  ;;  %v1488_v1 = vadd.f32 %v1456_v57, %v1391_v56  ;;  %v1198_v29 = vadd.f32 %v1166_v22, %v1101_v13  ;;  %v908_v55 = vadd.f32 %v876_v34, %v811_v33  ;;  %v599_v6 = vpop.f32.mrf.mxu2 }
 0x106   : > { %v1620_v3 = vadd.f32 %v2907_v51, %v1584_v59  ;;  %v909_v63 = vadd.f32 %v877_v54, %v812_v32  ;;  %v974_v9 = vmul.f32 %v2909_v53, %v2850_v48  ;;  %v1167_v22 = vmul.f32 %v2863_v4, %v2892_v35 }
 0x107   : > { %v2919_v7 = vmin.f32 %v639_v0, 6.0  ;;  %v1585_v8 = vadd.f32 %v1553_v2, %v1488_v1  ;;  %v1295_v60 = vadd.f32 %v1263_v46, %v1198_v29  ;;  %v1005_v0 = vadd.f32 %v973_v47, %v908_v55 }
 0x108   : > { %v2924_v14 = vld [vmem:[#allocation2 + $0x67] sm:$0xff]  ;;  %v1652_v17 = vmax.f32 %v1620_v3, 0.0  ;;  %v878_v33 = vmul.f32 %v2844_v42, %v2892_v35  ;;  %v600_v46 = vadd.f32 %v2818_v25, %v599_v6 }
 0x109   : > { %745 = vst [vmem:[#allocation2 + $0x70] sm:$0xff] %v2919_v7  ;;  %v1621_v16 = vadd.f32 %v2907_v51, %v1585_v8  ;;  %v1360_v19 = vmul.f32 %v2868_v11, %v2924_v14  ;;  %v1070_v40 = vmul.f32 %v2924_v14, %v2855_v58  ;;  %v1458_v2 = vmul.f32 %v2883_v23, %v2919_v7 }
 0x10a   : > { %v569_v21 = vpop.f32.mrf.mxu0  ;;  %v1684_v37 = vmin.f32 %v1652_v17, 6.0  ;;  %v651_v8 = vmax.f32 %v597_v62, 0.0  ;;  %v879_v32 = vmul.f32 %v2844_v42, %v2919_v7  ;;  %v652_v54 = vmax.f32 %v600_v46, 0.0 }
 0x10b   : > { %v570_v26 = vadd.f32 %v2818_v25, %v569_v21  ;;  %v1653_v27 = vmax.f32 %v1621_v16, 0.0  ;;  %v1392_v45 = vadd.f32 %v1360_v19, %v1294_v28  ;;  %v1102_v13 = vadd.f32 %v1070_v40, %v1005_v0 }
 0x10c   : > { %v2965_v20 = vmin.f32 %v651_v8, 6.0  ;;  %v1006_v21 = vadd.f32 %v974_v9, %v909_v63  ;;  %v2989_v63 = vmin.f32 %v652_v54, 6.0 }
 0x10d   : > { %v640_v36 = vmax.f32 %v570_v26, 0.0  ;;  %v1685_v44 = vmin.f32 %v1653_v27, 6.0  ;;  %v1489_v56 = vadd.f32 %v1457_v15, %v1392_v45  ;;  %v813_v27 = vmul.f32 %v2924_v14, %v2839_v39  ;;  %v601_v15 = vpop.f32.mrf.mxu2 }
 0x10e   : > { %757 = vst [vmem:[#allocation2 + $0x130] sm:$0xff] %v2965_v20  ;;  %v1168_v14 = vmul.f32 %v2863_v4, %v2919_v7 }
 0x10f   : > { %v2944_v49 = vmin.f32 %v640_v36, 6.0  ;;  %v1716_v50 = vpack.c.bf16 %v1685_v44, %v1684_v37  ;;  %v1199_v37 = vadd.f32 %v1167_v22, %v1102_v13  ;;  %758 = vst [vmem:[#allocation2 + $0x148] sm:$0xff] %v2989_v63 }
 0x110   : > { %v1328_v52 = vld [vmem:[#allocation2 + $0x6f] sm:$0xff] }
 0x111   : > { %v1521_v41 = vld [vmem:[#allocation2 + $0x69] sm:$0xff]  ;;  %746 = vst [vmem:[#allocation2 + $0x88] sm:$0xff] %v2944_v49  ;;  %1808 = vmatmul.bf16.vlgmr.msra.gmra.mxu1 %v1716_v50  ;;  %v1361_v43 = vmul.f32 %v2868_v11, %v1328_v52  ;;  %v1522_v61 = vld [vmem:[#allocation2 + $0x71] sm:$0xff]  ;;  %v1071_v10 = vmul.f32 %v1328_v52, %v2855_v58  ;;  %v814_v31 = vmul.f32 %v1328_v52, %v2839_v39 }
 0x112   : > { %v1554_v57 = vmul.f32 %v2886_v30, %v1521_v41  ;;  %v571_v59 = vpop.f32.mrf.mxu0  ;;  %v1555_v18 = vmul.f32 %v2886_v30, %v1522_v61  ;;  %v1264_v53 = vmul.f32 %v1521_v41, %v2865_v5  ;;  %v975_v40 = vmul.f32 %v1521_v41, %v2850_v48 }
 0x113   : > { %v572_v12 = vadd.f32 %v2818_v25, %v571_v59  ;;  %v1393_v1 = vadd.f32 %v1361_v43, %v1295_v60  ;;  %v1103_v28 = vadd.f32 %v1071_v10, %v1006_v21  ;;  %v910_v60 = vadd.f32 %v878_v33, %v813_v27 }
 0x114   : > { %v1586_v3 = vadd.f32 %v1554_v57, %v1489_v56  ;;  %v1296_v50 = vadd.f32 %v1264_v53, %v1199_v37  ;;  %v911_v55 = vadd.f32 %v879_v32, %v814_v31  ;;  %v1265_v62 = vmul.f32 %v1522_v61, %v2865_v5 }
 0x115   : > { %v641_v16 = vmax.f32 %v572_v12, 0.0  ;;  %v1490_v17 = vadd.f32 %v1458_v2, %v1393_v1  ;;  %v1200_v52 = vadd.f32 %v1168_v14, %v1103_v28  ;;  %v976_v7 = vmul.f32 %v1522_v61, %v2850_v48 }
 0x116   : > { %v1622_v19 = vadd.f32 %v2907_v51, %v1586_v3  ;;  %v1459_v2 = vmul.f32 %v2883_v23, %v2944_v49  ;;  %v1007_v8 = vadd.f32 %v975_v40, %v910_v60  ;;  %v1169_v10 = vmul.f32 %v2863_v4, %v2944_v49 }
 0x117   : > { %v2969_v24 = vmin.f32 %v641_v16, 6.0  ;;  %v1587_v26 = vadd.f32 %v1555_v18, %v1490_v17  ;;  %v1297_v3 = vadd.f32 %v1265_v62, %v1200_v52  ;;  %v1008_v9 = vadd.f32 %v976_v7, %v911_v55 }
 0x118   : > { %v1329_v29 = vld [vmem:[#allocation2 + $0x87] sm:$0xff]  ;;  %v1654_v36 = vmax.f32 %v1622_v19, 0.0  ;;  %v602_v19 = vadd.f32 %v2818_v25, %v601_v15 }
 0x119   : > { %747 = vst [vmem:[#allocation2 + $0x90] sm:$0xff] %v2969_v24  ;;  %v1623_v34 = vadd.f32 %v2907_v51, %v1587_v26  ;;  %v1362_v44 = vmul.f32 %v2868_v11, %v1329_v29  ;;  %v1072_v0 = vmul.f32 %v1329_v29, %v2855_v58  ;;  %v880_v26 = vmul.f32 %v2844_v42, %v2944_v49  ;;  %v604_v49 = vpop.f32.mrf.mxu2 }
 0x11a   : > { %v574_v45 = vpop.f32.mrf.mxu0  ;;  %v1686_v56 = vmin.f32 %v1654_v36, 6.0  ;;  %v1460_v28 = vmul.f32 %v2883_v23, %v2969_v24  ;;  %v815_v37 = vmul.f32 %v1329_v29, %v2839_v39  ;;  %v1170_v52 = vmul.f32 %v2863_v4, %v2969_v24 }
 0x11b   : > { %v575_v47 = vadd.f32 %v2818_v25, %v574_v45  ;;  %v1655_v35 = vmax.f32 %v1623_v34, 0.0  ;;  %v1394_v59 = vadd.f32 %v1362_v44, %v1296_v50  ;;  %v1104_v22 = vadd.f32 %v1072_v0, %v1007_v8 }
 0x11c   : > { %v653_v34 = vmax.f32 %v602_v19, 0.0  ;;  %v881_v40 = vmul.f32 %v2844_v42, %v2969_v24  ;;  %v605_v0 = vadd.f32 %v2818_v25, %v604_v49 }
 0x11d   : > { %v642_v43 = vmax.f32 %v575_v47, 0.0  ;;  %v1687_v57 = vmin.f32 %v1655_v35, 6.0  ;;  %v1491_v13 = vadd.f32 %v1459_v2, %v1394_v59  ;;  %v1201_v47 = vadd.f32 %v1169_v10, %v1104_v22 }
 0x11e   : > { %v3014_v32 = vmin.f32 %v653_v34, 6.0  ;;  %v654_v10 = vmax.f32 %v605_v0, 0.0 }
 0x11f   : > { %v2993_v12 = vmin.f32 %v642_v43, 6.0  ;;  %v1717_v1 = vpack.c.bf16 %v1687_v57, %v1686_v56  ;;  %v912_v43 = vadd.f32 %v880_v26, %v815_v37 }
 0x120   : > { %v1330_v41 = vld [vmem:[#allocation2 + $0x8f] sm:$0xff]  ;;  %759 = vst [vmem:[#allocation2 + $0x150] sm:$0xff] %v3014_v32  ;;  %v3033_v26 = vmin.f32 %v654_v10, 6.0 }
 0x121   : > { %v1523_v6 = vld [vmem:[#allocation2 + $0x89] sm:$0xff]  ;;  %748 = vst [vmem:[#allocation2 + $0xa8] sm:$0xff] %v2993_v12  ;;  %1813 = vmatmul.bf16.gmra.mxu1 %v1717_v1  ;;  %v1363_v61 = vmul.f32 %v2868_v11, %v1330_v41  ;;  %v1524_v16 = vld [vmem:[#allocation2 + $0x91] sm:$0xff]  ;;  %v1073_v21 = vmul.f32 %v1330_v41, %v2855_v58  ;;  %v816_v35 = vmul.f32 %v1330_v41, %v2839_v39  ;;  %v606_v22 = vpop.f32.mrf.mxu2 }
 0x122   : > { %v1556_v17 = vmul.f32 %v2886_v30, %v1523_v6  ;;  %v576_v18 = vpop.f32.mrf.mxu0  ;;  %v1557_v33 = vmul.f32 %v2886_v30, %v1524_v16  ;;  %v1266_v36 = vmul.f32 %v1523_v6, %v2865_v5  ;;  %v977_v50 = vmul.f32 %v1523_v6, %v2850_v48  ;;  %3772 = vst [vmem:[#allocation16_spill] sm:$0xff] %v3033_v26 }
 0x123   : > { %v577_v53 = vadd.f32 %v2818_v25, %v576_v18  ;;  %v1395_v27 = vadd.f32 %v1363_v61, %v1297_v3  ;;  %v1105_v46 = vadd.f32 %v1073_v21, %v1008_v9  ;;  %v1267_v29 = vmul.f32 %v1524_v16, %v2865_v5  ;;  %760 = vst [vmem:[#allocation2 + $0x168] sm:$0xff] %v3033_v26 }
 0x124   : > { %v1588_v31 = vadd.f32 %v1556_v17, %v1491_v13  ;;  %v1298_v54 = vadd.f32 %v1266_v36, %v1201_v47  ;;  %v913_v1 = vadd.f32 %v881_v40, %v816_v35  ;;  %v1009_v2 = vadd.f32 %v977_v50, %v912_v43 }
 0x125   : > { %v643_v44 = vmax.f32 %v577_v53, 0.0  ;;  %v1492_v45 = vadd.f32 %v1460_v28, %v1395_v27  ;;  %v1202_v59 = vadd.f32 %v1170_v52, %v1105_v46  ;;  %v1461_v24 = vmul.f32 %v2883_v23, %v2993_v12 }
 0x126   : > { %v1624_v14 = vadd.f32 %v2907_v51, %v1588_v31  ;;  %v978_v8 = vmul.f32 %v1524_v16, %v2850_v48  ;;  %v1171_v27 = vmul.f32 %v2863_v4, %v2993_v12  ;;  %v882_v28 = vmul.f32 %v2844_v42, %v2993_v12 }
 0x127   : > { %v675_v15 = vmin.f32 %v643_v44, 6.0  ;;  %v1589_v60 = vadd.f32 %v1557_v33, %v1492_v45  ;;  %v1299_v21 = vadd.f32 %v1267_v29, %v1202_v59 }
 0x128   : > { %v1331_v55 = vld [vmem:[#allocation2 + $0xa7] sm:$0xff]  ;;  %v1656_v57 = vmax.f32 %v1624_v14, 0.0  ;;  %v1010_v53 = vadd.f32 %v978_v8, %v913_v1 }
 0x129   : > { %749 = vst [vmem:[#allocation2 + $0xb0] sm:$0xff] %v675_v15  ;;  %v1625_v56 = vadd.f32 %v2907_v51, %v1589_v60  ;;  %v1364_v62 = vmul.f32 %v2868_v11, %v1331_v55  ;;  %v1074_v3 = vmul.f32 %v1331_v55, %v2855_v58  ;;  %v817_v13 = vmul.f32 %v1331_v55, %v2839_v39 }
 0x12a   : > { %v579_v7 = vpop.f32.mrf.mxu0  ;;  %v1688_v18 = vmin.f32 %v1656_v57, 6.0  ;;  %v1462_v33 = vmul.f32 %v2883_v23, %v675_v15  ;;  %v1172_v34 = vmul.f32 %v2863_v4, %v675_v15  ;;  %v883_v46 = vmul.f32 %v2844_v42, %v675_v15 }
 0x12b   : > { %v580_v41 = vadd.f32 %v2818_v25, %v579_v7  ;;  %v1657_v6 = vmax.f32 %v1625_v56, 0.0  ;;  %v1396_v9 = vadd.f32 %v1364_v62, %v1298_v54  ;;  %v1106_v61 = vadd.f32 %v1074_v3, %v1009_v2  ;;  %v609_v2 = vpop.f32.mrf.mxu2 }
 0x12c   : > { %v914_v49 = vadd.f32 %v882_v28, %v817_v13  ;;  %v607_v60 = vadd.f32 %v2818_v25, %v606_v22 }
 0x12d   : > { %v644_v17 = vmax.f32 %v580_v41, 0.0  ;;  %v1689_v19 = vmin.f32 %v1657_v6, 6.0  ;;  %v1493_v37 = vadd.f32 %v1461_v24, %v1396_v9  ;;  %v1203_v14 = vadd.f32 %v1171_v27, %v1106_v61 }
 0x12e   : > { %v655_v56 = vmax.f32 %v607_v60, 0.0 }
 0x12f   : > { %v676_v16 = vmin.f32 %v644_v17, 6.0  ;;  %v1718_v31 = vpack.c.bf16 %v1689_v19, %v1688_v18 }
 0x130   : > { %v1332_v36 = vld [vmem:[#allocation2 + $0xaf] sm:$0xff]  ;;  %v3055_v41 = vmin.f32 %v655_v56, 6.0 }
 0x131   : > { %v1525_v44 = vld [vmem:[#allocation2 + $0xa9] sm:$0xff]  ;;  %v1526_v45 = vld [vmem:[#allocation2 + $0xb1] sm:$0xff]  ;;  %750 = vst [vmem:[#allocation2 + $0xc8] sm:$0xff] %v676_v16  ;;  %1818 = vmatmul.bf16.gmra.mxu1 %v1718_v31  ;;  %v1365_v12 = vmul.f32 %v2868_v11, %v1332_v36  ;;  %v1075_v52 = vmul.f32 %v1332_v36, %v2855_v58  ;;  %v1463_v43 = vmul.f32 %v2883_v23, %v676_v16 }
 0x132   : > { %v1558_v47 = vmul.f32 %v2886_v30, %v1525_v44  ;;  %v1559_v35 = vmul.f32 %v2886_v30, %v1526_v45  ;;  %v581_v50 = vpop.f32.mrf.mxu0  ;;  %v1268_v29 = vmul.f32 %v1525_v44, %v2865_v5  ;;  %v1269_v54 = vmul.f32 %v1526_v45, %v2865_v5  ;;  %3773 = vst [vmem:[#allocation17_spill] sm:$0xff] %v3055_v41  ;;  %v3084_v56 = vld [vmem:[#allocation2 + $0x131] sm:$0xff] }
 0x133   : > { %v582_v15 = vadd.f32 %v2818_v25, %v581_v50  ;;  %v1397_v55 = vadd.f32 %v1365_v12, %v1299_v21  ;;  %v1107_v57 = vadd.f32 %v1075_v52, %v1010_v53  ;;  %v818_v62 = vmul.f32 %v1332_v36, %v2839_v39  ;;  %761 = vst [vmem:[#allocation2 + $0x170] sm:$0xff] %v3055_v41  ;;  %v3072_v50 = vld [vmem:[#allocation2 + $0x12f] sm:$0xff] }
 0x134   : > { %v1590_v40 = vadd.f32 %v1558_v47, %v1493_v37  ;;  %v1300_v59 = vadd.f32 %v1268_v29, %v1203_v14  ;;  %v979_v3 = vmul.f32 %v1525_v44, %v2850_v48  ;;  %v980_v8 = vmul.f32 %v1526_v45, %v2850_v48  ;;  %v3078_v52 = vld [vmem:[#allocation2 + $0x129] sm:$0xff] }
 0x135   : > { %v645_v7 = vmax.f32 %v582_v15, 0.0  ;;  %v1494_v0 = vadd.f32 %v1462_v33, %v1397_v55  ;;  %v1204_v6 = vadd.f32 %v1172_v34, %v1107_v57  ;;  %v915_v24 = vadd.f32 %v883_v46, %v818_v62  ;;  %v611_v55 = vpop.f32.mrf.mxu2 }
 0x136   : > { %v1626_v1 = vadd.f32 %v2907_v51, %v1590_v40  ;;  %v1011_v13 = vadd.f32 %v979_v3, %v914_v49  ;;  %v1173_v21 = vmul.f32 %v2863_v4, %v676_v16  ;;  %v884_v22 = vmul.f32 %v2844_v42, %v676_v16  ;;  %v3070_v49 = vld [vmem:[#allocation2 + $0x127] sm:$0xff] }
 0x137   : > { %v677_v9 = vmin.f32 %v645_v7, 6.0  ;;  %v1591_v10 = vadd.f32 %v1559_v35, %v1494_v0  ;;  %v1301_v17 = vadd.f32 %v1269_v54, %v1204_v6  ;;  %v1012_v19 = vadd.f32 %v980_v8, %v915_v24 }
 0x138   : > { %v1658_v61 = vmax.f32 %v1626_v1, 0.0  ;;  %v1333_v18 = vld [vmem:[#allocation2 + $0xc7] sm:$0xff]  ;;  %v610_v34 = vadd.f32 %v2818_v25, %v609_v2  ;;  %v3076_v60 = vmul.f32 %v2855_v58, %v3070_v49  ;;  %v3082_v40 = vmul.f32 %v2855_v58, %v3072_v50 }
 0x139   : > { %751 = vst [vmem:[#allocation2 + $0xd0] sm:$0xff] %v677_v9  ;;  %v1627_v53 = vadd.f32 %v2907_v51, %v1591_v10  ;;  %v1366_v28 = vmul.f32 %v2868_v11, %v1333_v18  ;;  %v1464_v31 = vmul.f32 %v2883_v23, %v677_v9  ;;  %v1076_v36 = vmul.f32 %v1333_v18, %v2855_v58 }
 0x13a   : > { %v1690_v27 = vmin.f32 %v1658_v61, 6.0  ;;  %v584_v33 = vpop.f32.mrf.mxu0  ;;  %v1174_v37 = vmul.f32 %v2863_v4, %v677_v9  ;;  %v819_v44 = vmul.f32 %v1333_v18, %v2839_v39  ;;  %v885_v46 = vmul.f32 %v2844_v42, %v677_v9 }
 0x13b   : > { %v585_v45 = vadd.f32 %v2818_v25, %v584_v33  ;;  %v1659_v16 = vmax.f32 %v1627_v53, 0.0  ;;  %v1398_v14 = vadd.f32 %v1366_v28, %v1300_v59  ;;  %v656_v12 = vmax.f32 %v610_v34, 0.0 }
 0x13c   : > { %v1108_v47 = vadd.f32 %v1076_v36, %v1011_v13  ;;  %v916_v35 = vadd.f32 %v884_v22, %v819_v44  ;;  %v612_v59 = vadd.f32 %v2818_v25, %v611_v55  ;;  %v3091_v7 = vmul.f32 %v2863_v4, %v2940_v38 }
 0x13d   : > { %v646_v29 = vmax.f32 %v585_v45, 0.0  ;;  %v1691_v54 = vmin.f32 %v1659_v16, 6.0  ;;  %v1495_v15 = vadd.f32 %v1463_v43, %v1398_v14  ;;  %v3086_v57 = vmin.f32 %v656_v12, 6.0 }
 0x13e   : > { %v1205_v62 = vadd.f32 %v1173_v21, %v1108_v47  ;;  %v3097_v43 = vmul.f32 %v2863_v4, %v2965_v20  ;;  %v3101_v2 = vmul.f32 %v2865_v5, %v3078_v52  ;;  %v657_v8 = vmax.f32 %v612_v59, 0.0  ;;  %v614_v59 = vpop.f32.mrf.mxu2 }
 0x13f   : > { %3774 = vst [vmem:[#allocation18_spill] sm:$0xff] %v3086_v57  ;;  %v3093_v0 = vmin.f32 %v646_v29, 6.0  ;;  %v1719_v1 = vpack.c.bf16 %v1691_v54, %v1690_v27  ;;  %v3106_v9 = vmul.f32 %v2865_v5, %v3084_v56  ;;  %v3110_v10 = vmul.f32 %v2868_v11, %v3070_v49 }
 0x140   : > { %v1334_v3 = vld [vmem:[#allocation2 + $0xcf] sm:$0xff]  ;;  %762 = vst [vmem:[#allocation2 + $0x188] sm:$0xff] %v3086_v57  ;;  %v3114_v61 = vmul.f32 %v2868_v11, %v3072_v50  ;;  %v3120_v53 = vmin.f32 %v657_v8, 6.0  ;;  %v3184_v41 = vmul.f32 %v2883_v23, %v2940_v38 }
 0x141   : > { %v1527_v6 = vld [vmem:[#allocation2 + $0xc9] sm:$0xff]  ;;  %v1528_v24 = vld [vmem:[#allocation2 + $0xd1] sm:$0xff]  ;;  %752 = vst [vmem:[#allocation2 + $0xe8] sm:$0xff] %v3093_v0  ;;  %1823 = vmatmul.bf16.gmra.mxu1 %v1719_v1  ;;  %v1367_v13 = vmul.f32 %v2868_v11, %v1334_v3  ;;  %v1077_v27 = vmul.f32 %v1334_v3, %v2855_v58  ;;  %v1465_v45 = vmul.f32 %v2883_v23, %v3093_v0 }
 0x142   : > { %v1560_v18 = vmul.f32 %v2886_v30, %v1527_v6  ;;  %v1561_v21 = vmul.f32 %v2886_v30, %v1528_v24  ;;  %v586_v22 = vpop.f32.mrf.mxu0  ;;  %3775 = vst [vmem:[#allocation19_spill] sm:$0xff] %v3120_v53  ;;  %v1270_v28 = vmul.f32 %v1527_v6, %v2865_v5  ;;  %v1271_v33 = vmul.f32 %v1528_v24, %v2865_v5 }
 0x143   : > { %v587_v34 = vadd.f32 %v2818_v25, %v586_v22  ;;  %v1399_v36 = vadd.f32 %v1367_v13, %v1301_v17  ;;  %763 = vst [vmem:[#allocation2 + $0x190] sm:$0xff] %v3120_v53  ;;  %v1109_v16 = vadd.f32 %v1077_v27, %v1012_v19  ;;  %v820_v12 = vmul.f32 %v1334_v3, %v2839_v39 }
 0x144   : > { %v1592_v44 = vadd.f32 %v1560_v18, %v1495_v15  ;;  %v1302_v14 = vadd.f32 %v1270_v28, %v1205_v62  ;;  %v981_v47 = vmul.f32 %v1527_v6, %v2850_v48  ;;  %v982_v1 = vmul.f32 %v1528_v24, %v2850_v48 }
 0x145   : > { %v647_v29 = vmax.f32 %v587_v34, 0.0  ;;  %v1496_v54 = vadd.f32 %v1464_v31, %v1399_v36  ;;  %v1206_v17 = vadd.f32 %v1174_v37, %v1109_v16  ;;  %v615_v15 = vadd.f32 %v2818_v25, %v614_v59  ;;  %v3149_v16 = vld [vmem:[#allocation2 + $0x14f] sm:$0xff] }
 0x146   : > { %v1628_v55 = vadd.f32 %v2907_v51, %v1592_v44  ;;  %v917_v8 = vadd.f32 %v885_v46, %v820_v12  ;;  %v1013_v13 = vadd.f32 %v981_v47, %v916_v35  ;;  %v1175_v62 = vmul.f32 %v2863_v4, %v3093_v0  ;;  %v3160_v59 = vld [vmem:[#allocation2 + $0x149] sm:$0xff] }
 0x147   : > { %v679_v18 = vmin.f32 %v647_v29, 6.0  ;;  %v1593_v22 = vadd.f32 %v1561_v21, %v1496_v54  ;;  %v1303_v3 = vadd.f32 %v1271_v33, %v1206_v17  ;;  %v658_v27 = vmax.f32 %v615_v15, 0.0  ;;  %v3143_v21 = vld [vmem:[#allocation2 + $0x147] sm:$0xff]  ;;  %3779 = vst [vmem:[#allocation23_spill] sm:$0xff] %v3160_v59 }
 0x148   : > { %v1660_v19 = vmax.f32 %v1628_v55, 0.0  ;;  %v1335_v6 = vld [vmem:[#allocation2 + $0xe7] sm:$0xff]  ;;  %v1014_v31 = vadd.f32 %v982_v1, %v917_v8  ;;  %v3138_v28 = vmul.f32 %v2883_v23, %v2989_v63  ;;  %v3153_v12 = vmul.f32 %v2868_v11, %v3143_v21  ;;  %v3162_v1 = vld [vmem:[#allocation2 + $0x151] sm:$0xff] }
 0x149   : > { %753 = vst [vmem:[#allocation2 + $0xf0] sm:$0xff] %v679_v18  ;;  %v1629_v37 = vadd.f32 %v2907_v51, %v1593_v22  ;;  %v1368_v46 = vmul.f32 %v2868_v11, %v1335_v6  ;;  %v1466_v35 = vmul.f32 %v2883_v23, %v679_v18  ;;  %v3145_v36 = vmin.f32 %v658_v27, 6.0 }
 0x14a   : > { %3776 = vst [vmem:[#allocation20_spill] sm:$0xff] %v3138_v28  ;;  %v1692_v24 = vmin.f32 %v1660_v19, 6.0  ;;  %v589_v34 = vpop.f32.mrf.mxu0  ;;  %v1078_v33 = vmul.f32 %v1335_v6, %v2855_v58  ;;  %v1176_v44 = vmul.f32 %v2863_v4, %v679_v18  ;;  %v3158_v55 = vmul.f32 %v2868_v11, %v3149_v16 }
 0x14b   : > { %3777 = vst [vmem:[#allocation21_spill] sm:$0xff] %v3145_v36  ;;  %v590_v47 = vadd.f32 %v2818_v25, %v589_v34  ;;  %v1661_v29 = vmax.f32 %v1629_v37, 0.0  ;;  %v1400_v54 = vadd.f32 %v1368_v46, %v1302_v14  ;;  %v3167_v15 = vmul.f32 %v2883_v23, %v3014_v32  ;;  %v616_v37 = vpop.f32.mrf.mxu2 }
 0x14c   : > { %3778 = vst [vmem:[#allocation22_spill] sm:$0xff] %v3158_v55  ;;  %v1110_v17 = vadd.f32 %v1078_v33, %v1013_v13  ;;  %v3171_v8 = vmul.f32 %v2886_v30, %v3160_v59  ;;  %v3175_v14 = vmul.f32 %v2886_v30, %v3162_v1  ;;  %v821_v46 = vmul.f32 %v1335_v6, %v2839_v39 }
 0x14d   : > { %3780 = vst [vmem:[#allocation24_spill] sm:$0xff] %v3162_v1  ;;  %v648_v22 = vmax.f32 %v590_v47, 0.0  ;;  %v1693_v19 = vmin.f32 %v1661_v29, 6.0  ;;  %v1497_v27 = vadd.f32 %v1465_v45, %v1400_v54  ;;  %v617_v13 = vadd.f32 %v2818_v25, %v616_v37 }
 0x14e   : > { %764 = vst [vmem:[#allocation2 + $0x1a8] sm:$0xff] %v3145_v36  ;;  %v1207_v34 = vadd.f32 %v1175_v62, %v1110_v17  ;;  %v886_v33 = vmul.f32 %v2844_v42, %v3093_v0  ;;  %v887_v36 = vmul.f32 %v2844_v42, %v679_v18  ;;  %v3188_v45 = vmul.f32 %v2883_v23, %v2965_v20 }
 0x14f   : > { %3781 = vst [vmem:[#allocation25_spill] sm:$0xff] %v3167_v15  ;;  %v680_v53 = vmin.f32 %v648_v22, 6.0  ;;  %v1720_v57 = vpack.c.bf16 %v1693_v19, %v1692_v24  ;;  %v659_v54 = vmax.f32 %v617_v13, 0.0  ;;  %v3192_v0 = vmul.f32 %v2886_v30, %v3078_v52 }
 0x150   : > { %3782 = vst [vmem:[#allocation26_spill] sm:$0xff] %v3171_v8  ;;  %v1336_v47 = vld [vmem:[#allocation2 + $0xef] sm:$0xff]  ;;  %v918_v62 = vadd.f32 %v886_v33, %v821_v46  ;;  %v3196_v18 = vmul.f32 %v2886_v30, %v3084_v56 }
 0x151   : > { %3783 = vst [vmem:[#allocation27_spill] sm:$0xff] %v3175_v14  ;;  %v1529_v6 = vld [vmem:[#allocation2 + $0xe9] sm:$0xff]  ;;  %v1530_v29 = vld [vmem:[#allocation2 + $0xf1] sm:$0xff]  ;;  %1828 = vmatmul.bf16.gmra.mxu1 %v1720_v57  ;;  %v1369_v38 = vmul.f32 %v2868_v11, %v1336_v47  ;;  %v3201_v22 = vmin.f32 %v659_v54, 6.0  ;;  %v1079_v19 = vmul.f32 %v1336_v47, %v2855_v58  ;;  %v1467_v57 = vmul.f32 %v2883_v23, %v680_v53 }
 0x152   : > { %3784 = vst [vmem:[#allocation28_spill] sm:$0xff] %v3196_v18  ;;  %v1562_v20 = vmul.f32 %v2886_v30, %v1529_v6  ;;  %v1563_v24 = vmul.f32 %v2886_v30, %v1530_v29  ;;  %v591_v17 = vpop.f32.mrf.mxu0  ;;  %v1272_v37 = vmul.f32 %v1529_v6, %v2865_v5  ;;  %v1273_v46 = vmul.f32 %v1530_v29, %v2865_v5 }
 0x153   : > { %754 = vst [vmem:[#allocation2 + $0x108] sm:$0xff] %v680_v53  ;;  %v592_v13 = vadd.f32 %v2818_v25, %v591_v17  ;;  %v1401_v33 = vadd.f32 %v1369_v38, %v1303_v3  ;;  %v1111_v26 = vadd.f32 %v1079_v19, %v1014_v31  ;;  %v888_v15 = vmul.f32 %v2844_v42, %v680_v53  ;;  %v619_v1 = vpop.f32.mrf.mxu2 }
 0x154   : > { %3785 = vst [vmem:[#allocation29_spill] sm:$0xff] %v3201_v22  ;;  %v1594_v14 = vadd.f32 %v1562_v20, %v1497_v27  ;;  %v1304_v8 = vadd.f32 %v1272_v37, %v1207_v34  ;;  %v822_v54 = vmul.f32 %v1336_v47, %v2839_v39  ;;  %v983_v59 = vmul.f32 %v1529_v6, %v2850_v48 }
 0x155   : > { %765 = vst [vmem:[#allocation2 + $0x1b0] sm:$0xff] %v3201_v22  ;;  %v649_v18 = vmax.f32 %v592_v13, 0.0  ;;  %v1498_v28 = vadd.f32 %v1466_v35, %v1401_v33  ;;  %v1208_v17 = vadd.f32 %v1176_v44, %v1111_v26  ;;  %v620_v3 = vadd.f32 %v2818_v25, %v619_v1  ;;  %v858_v1 = vld [vmem:[#allocation2 + $0x130] sm:$0xff] }
 0x156   : > { %v1630_v55 = vadd.f32 %v2907_v51, %v1594_v14  ;;  %v919_v27 = vadd.f32 %v887_v36, %v822_v54  ;;  %v984_v38 = vmul.f32 %v1530_v29, %v2850_v48  ;;  %v1015_v19 = vadd.f32 %v983_v59, %v918_v62  ;;  %v857_v36 = vld [vmem:[#allocation2 + $0x128] sm:$0xff] }
 0x157   : > { %v681_v20 = vmin.f32 %v649_v18, 6.0  ;;  %v1595_v31 = vadd.f32 %v1563_v24, %v1498_v28  ;;  %v1305_v37 = vadd.f32 %v1273_v46, %v1208_v17  ;;  %v660_v47 = vmax.f32 %v620_v3, 0.0 }
 0x158   : > { %v1662_v34 = vmax.f32 %v1630_v55, 0.0  ;;  %v1016_v13 = vadd.f32 %v984_v38, %v919_v27  ;;  %v1177_v35 = vmul.f32 %v2863_v4, %v680_v53  ;;  %v825_v18 = vmul.f32 %v3070_v49, %v2839_v39  ;;  %v3237_v49 = vld [vmem:[%s3738_s2] ss:$0 sm:$0xff] }
 0x159   : > { %755 = vst [vmem:[#allocation2 + $0x110] sm:$0xff] %v681_v20  ;;  %v1631_v14 = vadd.f32 %v2907_v51, %v1595_v31  ;;  %v1468_v25 = vmul.f32 %v2883_v23, %v681_v20  ;;  %v3219_v44 = vmin.f32 %v660_v47, 6.0  ;;  %v889_v55 = vmul.f32 %v2844_v42, %v681_v20 }
 0x15a   : > { %v1337_v22 = vld [vmem:[#allocation2 + $0x107] sm:$0xff]  ;;  %v1694_v6 = vmin.f32 %v1662_v34, 6.0  ;;  %v1178_v62 = vmul.f32 %v2863_v4, %v681_v20  ;;  %v826_v33 = vmul.f32 %v3072_v50, %v2839_v39  ;;  %v890_v54 = vmul.f32 %v2844_v42, %v857_v36 }
 0x15b   : > { %v1370_v26 = vmul.f32 %v2868_v11, %v1337_v22  ;;  %v823_v28 = vmul.f32 %v1337_v22, %v2839_v39  ;;  %v1080_v59 = vmul.f32 %v1337_v22, %v2855_v58  ;;  %v1663_v29 = vmax.f32 %v1631_v14, 0.0  ;;  %766 = vst [vmem:[#allocation2 + $0x1c8] sm:$0xff] %v3219_v44  ;;  %v621_v22 = vpop.f32.mrf.mxu2 }
 0x15c   : > { %v891_v27 = vmul.f32 %v2844_v42, %v858_v1  ;;  %v922_v20 = vadd.f32 %v890_v54, %v825_v18  ;;  %v988_v50 = vmul.f32 %v3084_v56, %v2850_v48  ;;  %v1084_v34 = vmul.f32 %v3143_v21, %v2855_v58 }
 0x15d   : > { %v1402_v53 = vadd.f32 %v1370_v26, %v1304_v8  ;;  %v920_v24 = vadd.f32 %v888_v15, %v823_v28  ;;  %v1112_v46 = vadd.f32 %v1080_v59, %v1015_v19  ;;  %v1695_v17 = vmin.f32 %v1663_v29, 6.0 }
 0x15e   : > { %v987_v8 = vmul.f32 %v3078_v52, %v2850_v48  ;;  %v622_v15 = vadd.f32 %v3237_v49, %v621_v22  ;;  %v1085_v52 = vmul.f32 %v3149_v16, %v2855_v58  ;;  %v1182_v28 = vmul.f32 %v2863_v4, %v3014_v32 }
 0x15f   : > { %v1499_v3 = vadd.f32 %v1467_v57, %v1402_v53  ;;  %v1209_v38 = vadd.f32 %v1177_v35, %v1112_v46  ;;  %v1721_v31 = vpack.c.bf16 %v1695_v17, %v1694_v6  ;;  %v923_v57 = vadd.f32 %v891_v27, %v826_v33 }
 0x160   : > { %v1338_v19 = vld [vmem:[#allocation2 + $0x10f] sm:$0xff]  ;;  %v661_v26 = vmax.f32 %v622_v15, 0.0  ;;  %v1019_v36 = vadd.f32 %v987_v8, %v922_v20  ;;  %v1181_v35 = vmul.f32 %v2863_v4, %v2989_v63 }
 0x161   : > { %v1531_v47 = vld [vmem:[#allocation2 + $0x109] sm:$0xff]  ;;  %v1532_v14 = vld [vmem:[#allocation2 + $0x111] sm:$0xff]  ;;  %1833 = vmatmul.bf16.gmra.mxu1 %v1721_v31  ;;  %v1371_v56 = vmul.f32 %v2868_v11, %v1338_v19  ;;  %v824_v1 = vmul.f32 %v1338_v19, %v2839_v39  ;;  %v1081_v63 = vmul.f32 %v1338_v19, %v2855_v58  ;;  %v1020_v27 = vadd.f32 %v988_v50, %v923_v57 }
 0x162   : > { %v1564_v6 = vmul.f32 %v2886_v30, %v1531_v47  ;;  %v1565_v59 = vmul.f32 %v2886_v30, %v1532_v14  ;;  %v985_v29 = vmul.f32 %v1531_v47, %v2850_v48  ;;  %v986_v53 = vmul.f32 %v1532_v14, %v2850_v48 }
 0x163   : > { %v3256_v18 = vmin.f32 %v661_v26, 6.0  ;;  %v1403_v46 = vadd.f32 %v1371_v56, %v1305_v37  ;;  %v921_v32 = vadd.f32 %v889_v55, %v824_v1  ;;  %v1274_v54 = vmul.f32 %v1531_v47, %v2865_v5  ;;  %v624_v26 = vpop.f32.mrf.mxu2 }
 0x164   : > { %v1596_v33 = vadd.f32 %v1564_v6, %v1499_v3  ;;  %v1017_v17 = vadd.f32 %v985_v29, %v920_v24  ;;  %v1113_v22 = vadd.f32 %v1081_v63, %v1016_v13  ;;  %v1275_v30 = vmul.f32 %v1532_v14, %v2865_v5  ;;  %v3286_v63 = vld [vmem:[#allocation2 + $0x16f] sm:$0xff] }
 0x165   : > { %767 = vst [vmem:[#allocation2 + $0x1d0] sm:$0xff] %v3256_v18  ;;  %v1500_v8 = vadd.f32 %v1468_v25, %v1403_v46  ;;  %v1018_v20 = vadd.f32 %v986_v53, %v921_v32  ;;  %v1306_v31 = vadd.f32 %v1274_v54, %v1209_v38  ;;  %v625_v55 = vadd.f32 %v3237_v49, %v624_v26  ;;  %v3790_v54 = vld [vmem:[#allocation28_spill] sm:$0xff] }
 0x166   : > { %v1632_v15 = vadd.f32 %v2907_v51, %v1596_v33  ;;  %v1114_v19 = vadd.f32 %v3076_v60, %v1017_v17  ;;  %v1210_v37 = vadd.f32 %v1178_v62, %v1113_v22  ;;  %v1116_v3 = vadd.f32 %v1084_v34, %v1019_v36  ;;  %v3788_v33 = vld [vmem:[#allocation22_spill] sm:$0xff]  ;;  %v3297_v26 = vld [vmem:[#allocation2 + $0x169] sm:$0xff] }
 0x167   : > { %v1597_v47 = vadd.f32 %v1565_v59, %v1500_v8  ;;  %v1115_v56 = vadd.f32 %v3082_v40, %v1018_v20  ;;  %v1404_v13 = vadd.f32 %v3110_v10, %v1306_v31  ;;  %v662_v57 = vmax.f32 %v625_v55, 0.0  ;;  %v3275_v10 = vld [vmem:[#allocation2 + $0x167] sm:$0xff]  ;;  %v3791_v8 = vld [vmem:[#allocation25_spill] sm:$0xff] }
 0x168   : > { %v1664_v24 = vmax.f32 %v1632_v15, 0.0  ;;  %v1211_v50 = vadd.f32 %v3091_v7, %v1114_v19  ;;  %v1307_v25 = vadd.f32 %v1275_v30, %v1210_v37  ;;  %v1117_v14 = vadd.f32 %v1085_v52, %v1020_v27  ;;  %v3792_v19 = vld [vmem:[#allocation26_spill] sm:$0xff] }
 0x169   : > { %v1633_v38 = vadd.f32 %v2907_v51, %v1597_v47  ;;  %v1212_v60 = vadd.f32 %v3097_v43, %v1115_v56  ;;  %v1501_v62 = vadd.f32 %v3184_v41, %v1404_v13  ;;  %v3273_v59 = vmin.f32 %v662_v57, 6.0  ;;  %v3786_v41 = vld [vmem:[#allocation23_spill] sm:$0xff]  ;;  %v3793_v47 = vld [vmem:[#allocation16_spill] sm:$0xff]  ;;  %v3795_v57 = vld [vmem:[#allocation17_spill] sm:$0xff] }
 0x16a   : > { %v1696_v6 = vmin.f32 %v1664_v24, 6.0  ;;  %v1308_v34 = vadd.f32 %v3101_v2, %v1211_v50  ;;  %v1405_v36 = vadd.f32 %v3114_v61, %v1307_v25  ;;  %v1213_v40 = vadd.f32 %v1181_v35, %v1116_v3  ;;  %v3787_v61 = vld [vmem:[#allocation24_spill] sm:$0xff]  ;;  %v3794_v13 = vld [vmem:[#allocation27_spill] sm:$0xff] }
 0x16b   : > { %v1665_v7 = vmax.f32 %v1633_v38, 0.0  ;;  %v1309_v1 = vadd.f32 %v3106_v9, %v1212_v60  ;;  %v1598_v52 = vadd.f32 %v3192_v0, %v1501_v62  ;;  %v1214_v29 = vadd.f32 %v1182_v28, %v1117_v14  ;;  %768 = vst [vmem:[#allocation2 + $0x1e8] sm:$0xff] %v3273_v59  ;;  %v626_v28 = vpop.f32.mrf.mxu2  ;;  %v3303_v56 = vld [vmem:[#allocation2 + $0x171] sm:$0xff]  ;;  %v3311_v38 = vld [vmem:[%s3740_s4] ss:$0 sm:$0xff] }
 0x16c   : > { %v1406_v53 = vadd.f32 %v3153_v12, %v1308_v34  ;;  %v1502_v43 = vadd.f32 %v3188_v45, %v1405_v36  ;;  %v1278_v2 = vmul.f32 %v3786_v41, %v2865_v5  ;;  %v1279_v35 = vmul.f32 %v3787_v61, %v2865_v5  ;;  %v3789_v45 = vld [vmem:[#allocation20_spill] sm:$0xff]  ;;  %v3314_v62 = vld [vmem:[#allocation8 + $0x8] ss:$0 sm:$0xff] }
 0x16d   : > { %v1697_v46 = vmin.f32 %v1665_v7, 6.0  ;;  %v1407_v9 = vadd.f32 %v3788_v33, %v1309_v1  ;;  %v1634_v0 = vadd.f32 %v2907_v51, %v1598_v52  ;;  %v1376_v12 = vmul.f32 %v2868_v11, %v3275_v10 }
 0x16e   : > { %v1503_v32 = vadd.f32 %v3789_v45, %v1406_v53  ;;  %v1599_v17 = vadd.f32 %v3790_v54, %v1502_v43  ;;  %v1310_v22 = vadd.f32 %v1278_v2, %v1213_v40  ;;  %v1311_v30 = vadd.f32 %v1279_v35, %v1214_v29  ;;  %v860_v54 = vld [vmem:[#allocation2 + $0x150] sm:$0xff] }
 0x16f   : > { %v1722_v27 = vpack.c.bf16 %v1697_v46, %v1696_v6  ;;  %v1504_v15 = vadd.f32 %v3791_v8, %v1407_v9  ;;  %v1666_v20 = vmax.f32 %v1634_v0, 0.0  ;;  %v1377_v31 = vmul.f32 %v2868_v11, %v3286_v63  ;;  %v859_v9 = vld [vmem:[#allocation2 + $0x148] sm:$0xff] }
 0x170   : > { %v1600_v37 = vadd.f32 %v3792_v19, %v1503_v32  ;;  %v1635_v55 = vadd.f32 %v2907_v51, %v1599_v17  ;;  %v1408_v3 = vadd.f32 %v1376_v12, %v1310_v22  ;;  %v1473_v24 = vmul.f32 %v2883_v23, %v3793_v47 }
 0x171   : > { %1838 = vmatmul.bf16.gmra.mxu1 %v1722_v27  ;;  %v1601_v50 = vadd.f32 %v3794_v13, %v1504_v15  ;;  %v1409_v25 = vadd.f32 %v1377_v31, %v1311_v30  ;;  %v1474_v14 = vmul.f32 %v2883_v23, %v3795_v57  ;;  %v1570_v34 = vmul.f32 %v3314_v62, %v3297_v26 }
 0x172   : > { %v1636_v51 = vadd.f32 %v3311_v38, %v1600_v37  ;;  %v1667_v6 = vmax.f32 %v1635_v55, 0.0  ;;  %v1505_v60 = vadd.f32 %v1473_v24, %v1408_v3  ;;  %v1571_v7 = vmul.f32 %v3314_v62, %v3303_v56 }
 0x173   : > { %v1637_v36 = vadd.f32 %v3311_v38, %v1601_v50  ;;  %v1506_v40 = vadd.f32 %v1474_v14, %v1409_v25  ;;  %v627_v1 = vadd.f32 %v3237_v49, %v626_v28  ;;  %v1698_v29 = vmin.f32 %v1666_v20, 6.0  ;;  %v629_v33 = vpop.f32.mrf.mxu2 }
 0x174   : > { %v1668_v52 = vmax.f32 %v1636_v51, 0.0  ;;  %v1699_v53 = vmin.f32 %v1667_v6, 6.0  ;;  %v1602_v43 = vadd.f32 %v1570_v34, %v1505_v60  ;;  %v630_v45 = vadd.f32 %v3237_v49, %v629_v33  ;;  %v3348_v51 = vld [vmem:[#allocation2 + $0x187] sm:$0xff] }
 0x175   : > { %v1669_v2 = vmax.f32 %v1637_v36, 0.0  ;;  %v1603_v35 = vadd.f32 %v1571_v7, %v1506_v40  ;;  %v663_v46 = vmax.f32 %v627_v1, 0.0  ;;  %v827_v32 = vmul.f32 %v3143_v21, %v2839_v39  ;;  %v3361_v7 = vld [vmem:[#allocation2 + $0x189] sm:$0xff] }
 0x176   : > { %v1723_v0 = vpack.c.bf16 %v1699_v53, %v1698_v29  ;;  %v1638_v12 = vadd.f32 %v3311_v38, %v1602_v43  ;;  %v1700_v17 = vmin.f32 %v1668_v52, 6.0  ;;  %v664_v8 = vmax.f32 %v630_v45, 0.0  ;;  %v861_v43 = vld [vmem:[#allocation2 + $0x168] sm:$0xff] }
 0x177   : > { %v1701_v28 = vmin.f32 %v1669_v2, 6.0  ;;  %v1639_v22 = vadd.f32 %v3311_v38, %v1603_v35  ;;  %v3327_v30 = vmin.f32 %v663_v46, 6.0  ;;  %v828_v15 = vmul.f32 %v3149_v16, %v2839_v39  ;;  %v862_v2 = vld [vmem:[#allocation2 + $0x170] sm:$0xff]  ;;  %v3797_v33 = vld [vmem:[#allocation19_spill] sm:$0xff] }
 0x178   : > { %v1670_v27 = vmax.f32 %v1638_v12, 0.0  ;;  %v892_v20 = vmul.f32 %v2844_v42, %v859_v9  ;;  %v893_v21 = vmul.f32 %v2844_v42, %v860_v54  ;;  %v989_v37 = vmul.f32 %v3786_v41, %v2850_v48  ;;  %v3350_v41 = vld [vmem:[#allocation2 + $0x18f] sm:$0xff] }
 0x179   : > { %v1724_v31 = vpack.c.bf16 %v1701_v28, %v1700_v17  ;;  %v1671_v19 = vmax.f32 %v1639_v22, 0.0  ;;  %769 = vst [vmem:[#allocation2 + $0x1f0] sm:$0xff] %v3327_v30  ;;  %v3338_v3 = vmin.f32 %v664_v8, 6.0  ;;  %v990_v13 = vmul.f32 %v3787_v61, %v2850_v48  ;;  %v1540_v22 = vld [vmem:[#allocation2 + $0x191] sm:$0xff] }
 0x17a   : > { %v3336_v55 = vmin.f32 %v1670_v27, 6.0  ;;  %v924_v24 = vadd.f32 %v892_v20, %v827_v32  ;;  %v925_v50 = vadd.f32 %v893_v21, %v828_v15  ;;  %v1086_v25 = vmul.f32 %v3275_v10, %v2855_v58 }
 0x17b   : > { %1848 = vmatmul.bf16.vlgmr.msra.gmra.mxu3 %v1724_v31  ;;  %v3342_v16 = vmin.f32 %v1671_v19, 6.0  ;;  %v1087_v14 = vmul.f32 %v3286_v63, %v2855_v58  ;;  %770 = vst [vmem:[#allocation2 + $0x208] sm:$0xff] %v3338_v3  ;;  %v1183_v61 = vmul.f32 %v2863_v4, %v3793_v47  ;;  %v1184_v36 = vmul.f32 %v2863_v4, %v3795_v57  ;;  %v631_v1 = vpop.f32.mrf.mxu2  ;;  %v3796_v57 = vld [vmem:[#allocation18_spill] sm:$0xff] }
 0x17c   : > { %v1021_v6 = vadd.f32 %v989_v37, %v924_v24  ;;  %v1022_v34 = vadd.f32 %v990_v13, %v925_v50  ;;  %v1280_v40 = vmul.f32 %v3297_v26, %v2865_v5  ;;  %v1281_v29 = vmul.f32 %v3303_v56, %v2865_v5  ;;  %v3389_v19 = vld [vmem:[%s2761_s9] sm:$0xff]  }
 0x17d   : > { %v1725_v60 = vpack.c.bf16 %v3342_v16, %v3336_v55  ;;  %v1378_v47 = vmul.f32 %v2868_v11, %v3348_v51  ;;  %v1379_v53 = vmul.f32 %v2868_v11, %v3350_v41  ;;  %v1475_v46 = vmul.f32 %v2883_v23, %v3796_v57 }
 0x17e   : > { %v1118_v52 = vadd.f32 %v1086_v25, %v1021_v6  ;;  %v1119_v35 = vadd.f32 %v1087_v14, %v1022_v34  ;;  %v1476_v9 = vmul.f32 %v2883_v23, %v3797_v33  ;;  %v632_v12 = vadd.f32 %v3237_v49, %v631_v1  ;;  %v3403_v34 = vld [vmem:[#allocation2 + $0x1af] sm:$0xff] }
 0x17f   : > { %v1572_v32 = vmul.f32 %v3314_v62, %v3361_v7  ;;  %v829_v54 = vmul.f32 %v3275_v10, %v2839_v39  ;;  %v830_v17 = vmul.f32 %v3286_v63, %v2839_v39  ;;  %v894_v8 = vmul.f32 %v2844_v42, %v861_v43 }
 0x180   : > { %v1215_v45 = vadd.f32 %v1183_v61, %v1118_v52  ;;  %v1216_v28 = vadd.f32 %v1184_v36, %v1119_v35  ;;  %v665_v27 = vmax.f32 %v632_v12, 0.0  ;;  %v895_v15 = vmul.f32 %v2844_v42, %v862_v2  ;;  %v863_v35 = vld [vmem:[#allocation2 + $0x188] sm:$0xff]  ;;  %v3798_v12 = vld [vmem:[#allocation21_spill] sm:$0xff] }
 0x181   : > { %1843 = vmatmul.bf16.gmra.mxu1 %v1723_v0  ;;  %v991_v49 = vmul.f32 %v3297_v26, %v2850_v48  ;;  %v992_v31 = vmul.f32 %v3303_v56, %v2850_v48  ;;  %v1088_v10 = vmul.f32 %v3348_v51, %v2855_v58  ;;  %v926_v21 = vadd.f32 %v894_v8, %v829_v54  ;;  %v3398_v56 = vld [vmem:[#allocation2 + $0x1a7] sm:$0xff]  ;;  %v3419_v8 = vld [vmem:[#allocation2 + $0x1b1] sm:$0xff] }
 0x182   : > { %v1312_v20 = vadd.f32 %v1280_v40, %v1215_v45  ;;  %v1313_v63 = vadd.f32 %v1281_v29, %v1216_v28  ;;  %v3391_v0 = vmin.f32 %v665_v27, 6.0  ;;  %v927_v37 = vadd.f32 %v895_v15, %v830_v17  ;;  %v3409_v29 = vld [vmem:[#allocation2 + $0x1a9] sm:$0xff]  ;;  %v3799_v45 = vld [vmem:[#allocation29_spill] sm:$0xff] }
 0x183   : > { %v1573_v13 = vmul.f32 %v3314_v62, %v1540_v22  ;;  %v1089_v50 = vmul.f32 %v3350_v41, %v2855_v58  ;;  %v1185_v26 = vmul.f32 %v2863_v4, %v3796_v57  ;;  %v1023_v14 = vadd.f32 %v991_v49, %v926_v21  ;;  %v864_v17 = vld [vmem:[#allocation2 + $0x190] sm:$0xff] }
 0x184   : > { %v1410_v24 = vadd.f32 %v1378_v47, %v1312_v20  ;;  %v1411_v25 = vadd.f32 %v1379_v53, %v1313_v63  ;;  %771 = vst [vmem:[#allocation2 + $0x210] sm:$0xff] %v3391_v0  ;;  %v1024_v6 = vadd.f32 %v992_v31, %v927_v37  ;;  %v1186_v61 = vmul.f32 %v2863_v4, %v3797_v33 }
 0x185   : > { %v1889_v36 = vunpack.c.l.bf16 %v3389_v19  ;;  %v1282_v1 = vmul.f32 %v3361_v7, %v2865_v5  ;;  %v1283_v52 = vmul.f32 %v1540_v22, %v2865_v5  ;;  %v1120_v53 = vadd.f32 %v1088_v10, %v1023_v14  ;;  %v3435_v10 = vld [vmem:[%s3742_s6] ss:$0 sm:$0xff] }
 0x186   : > { %v1507_v40 = vadd.f32 %v1475_v46, %v1410_v24  ;;  %v1508_v47 = vadd.f32 %v1476_v9, %v1411_v25  ;;  %v1121_v43 = vadd.f32 %v1089_v50, %v1024_v6  ;;  %v1380_v2 = vmul.f32 %v2868_v11, %v3398_v56 }
 0x187   : > { %v1381_v33 = vmul.f32 %v2868_v11, %v3403_v34  ;;  %v1477_v46 = vmul.f32 %v2883_v23, %v3798_v12  ;;  %v1478_v54 = vmul.f32 %v2883_v23, %v3799_v45  ;;  %v1217_v27 = vadd.f32 %v1185_v26, %v1120_v53 }
 0x188   : > { %v1604_v57 = vadd.f32 %v1572_v32, %v1507_v40  ;;  %v1605_v28 = vadd.f32 %v1573_v13, %v1508_v47  ;;  %v1218_v9 = vadd.f32 %v1186_v61, %v1121_v43  ;;  %v1574_v15 = vmul.f32 %v3314_v62, %v3409_v29 }
 0x189   : > { %v831_v20 = vmul.f32 %v3348_v51, %v2839_v39  ;;  %v832_v49 = vmul.f32 %v3350_v41, %v2839_v39  ;;  %v896_v31 = vmul.f32 %v2844_v42, %v863_v35  ;;  %v1314_v21 = vadd.f32 %v1282_v1, %v1217_v27  ;;  %v3458_v27 = vld [vmem:[%s2761_s9 + $0x8] sm:$0xff]  }
 0x18a   : > { %v1640_v32 = vadd.f32 %v3311_v38, %v1604_v57  ;;  %v1641_v63 = vadd.f32 %v3311_v38, %v1605_v28  ;;  %v1315_v37 = vadd.f32 %v1283_v52, %v1218_v9  ;;  %v897_v51 = vmul.f32 %v2844_v42, %v864_v17  ;;  %v3455_v28 = vld [vmem:[#allocation2 + $0x1cf] sm:$0xff] }
 0x18b   : > { %1853 = vmatmul.bf16.gmra.mxu3 %v1725_v60  ;;  %v1575_v41 = vmul.f32 %v3314_v62, %v3419_v8  ;;  %v928_v24 = vadd.f32 %v896_v31, %v831_v20  ;;  %v993_v13 = vmul.f32 %v3361_v7, %v2850_v48  ;;  %v994_v55 = vmul.f32 %v1540_v22, %v2850_v48  ;;  %v3472_v20 = vld [vmem:[#allocation2 + $0x1c9] sm:$0xff] }
 0x18c   : > { %v1672_v16 = vmax.f32 %v1640_v32, 0.0  ;;  %v1412_v60 = vadd.f32 %v1380_v2, %v1314_v21  ;;  %v1413_v50 = vadd.f32 %v1381_v33, %v1315_v37  ;;  %v929_v26 = vadd.f32 %v897_v51, %v832_v49  ;;  %v3453_v2 = vld [vmem:[#allocation2 + $0x1c7] sm:$0xff]  ;;  %v3478_v37 = vld [vmem:[#allocation2 + $0x1d1] sm:$0xff] }
 0x18d   : > { %v1025_v14 = vadd.f32 %v993_v13, %v928_v24  ;;  %v1090_v6 = vmul.f32 %v3398_v56, %v2855_v58  ;;  %v1091_v61 = vmul.f32 %v3403_v34, %v2855_v58  ;;  %v1673_v1 = vmax.f32 %v1641_v63, 0.0 }
 0x18e   : > { %v1809_v25 = vpop.f32.mrf.mxu1  ;;  %v1509_v7 = vadd.f32 %v1477_v46, %v1412_v60  ;;  %v1510_v52 = vadd.f32 %v1478_v54, %v1413_v50  ;;  %v1890_v22 = vunpack.c.h.bf16 %v3389_v19  ;;  %v1026_v47 = vadd.f32 %v994_v55, %v929_v26  ;;  %v865_v55 = vld [vmem:[#allocation2 + $0x1a8] sm:$0xff] }
 0x18f   : > { %v1810_v40 = vadd.f32 %v3435_v10, %v1809_v25  ;;  %v1122_v53 = vadd.f32 %v1090_v6, %v1025_v14  ;;  %v1187_v43 = vmul.f32 %v2863_v4, %v3798_v12  ;;  %v1704_v57 = vmin.f32 %v1672_v16, 6.0 }
 0x190   : > { %v1606_v33 = vadd.f32 %v1574_v15, %v1509_v7  ;;  %v1607_v17 = vadd.f32 %v1575_v41, %v1510_v52  ;;  %v1123_v9 = vadd.f32 %v1091_v61, %v1026_v47  ;;  %v1188_v46 = vmul.f32 %v2863_v4, %v3799_v45 }
 0x191   : > { %v1921_v35 = vadd.f32 %v1889_v36, %v1810_v40  ;;  %v1219_v19 = vadd.f32 %v1187_v43, %v1122_v53  ;;  %v1284_v54 = vmul.f32 %v3409_v29, %v2865_v5  ;;  %v1705_v36 = vmin.f32 %v1673_v1, 6.0 }
 0x192   : > { %v1642_v12 = vadd.f32 %v3311_v38, %v1606_v33  ;;  %v1285_v15 = vmul.f32 %v3419_v8, %v2865_v5  ;;  %v1382_v32 = vmul.f32 %v2868_v11, %v3453_v2  ;;  %v1220_v49 = vadd.f32 %v1188_v46, %v1123_v9 }
 0x193   : > { %1953 = vst [vmem:[%s3464_s20] sm:$0xff] %v1921_v35  ;;  %v1316_v31 = vadd.f32 %v1284_v54, %v1219_v19  ;;  %v1383_v63 = vmul.f32 %v2868_v11, %v3455_v28  ;;  %v1479_v21 = vmul.f32 %v2883_v23, %v3219_v44  ;;  %v1891_v51 = vunpack.c.l.bf16 %v3458_v27 }
 0x194   : > { %v1892_v41 = vunpack.c.h.bf16 %v3458_v27  ;;  %v1643_v24 = vadd.f32 %v3311_v38, %v1607_v17  ;;  %v1480_v13 = vmul.f32 %v2883_v23, %v3256_v18  ;;  %v1317_v60 = vadd.f32 %v1285_v15, %v1220_v49 }
 0x195   : > { %v1414_v50 = vadd.f32 %v1382_v32, %v1316_v31  ;;  %v1576_v26 = vmul.f32 %v3314_v62, %v3472_v20  ;;  %v833_v25 = vmul.f32 %v3398_v56, %v2839_v39  ;;  %v1726_v6 = vpack.c.bf16 %v1705_v36, %v1704_v57 }
 0x196   : > { %v1811_v16 = vpop.f32.mrf.mxu1  ;;  %v1674_v61 = vmax.f32 %v1642_v12, 0.0  ;;  %v1577_v40 = vmul.f32 %v3314_v62, %v3478_v37  ;;  %v1415_v1 = vadd.f32 %v1383_v63, %v1317_v60  ;;  %v834_v52 = vmul.f32 %v3403_v34, %v2839_v39  ;;  %v3511_v12 = vld [vmem:[#allocation2 + $0x1e7] sm:$0xff] }
 0x197   : > { %v1812_v14 = vadd.f32 %v3435_v10, %v1811_v16  ;;  %v1511_v7 = vadd.f32 %v1479_v21, %v1414_v50  ;;  %v898_v47 = vmul.f32 %v2844_v42, %v865_v55  ;;  %v1675_v43 = vmax.f32 %v1643_v24, 0.0  ;;  %v3524_v55 = vld [vmem:[#allocation2 + $0x1e9] sm:$0xff] }
 0x198   : > { %v899_v56 = vmul.f32 %v2844_v42, %v3799_v45  ;;  %v995_v35 = vmul.f32 %v3409_v29, %v2850_v48  ;;  %v1512_v57 = vadd.f32 %v1480_v13, %v1415_v1  ;;  %v996_v9 = vmul.f32 %v3419_v8, %v2850_v48  ;;  %v3513_v8 = vld [vmem:[#allocation2 + $0x1ef] sm:$0xff] }
 0x199   : > { %v1922_v53 = vadd.f32 %v1890_v22, %v1812_v14  ;;  %v1608_v33 = vadd.f32 %v1576_v26, %v1511_v7  ;;  %v930_v17 = vadd.f32 %v898_v47, %v833_v25  ;;  %v3502_v46 = vmin.f32 %v1674_v61, 6.0  ;;  %v3531_v25 = vld [vmem:[#allocation2 + $0x1f1] sm:$0xff]  ;;  %v867_v1 = vld [vmem:[#allocation2 + $0x1c8] sm:$0xff] }
 0x19a   : > { %v931_v34 = vadd.f32 %v899_v56, %v834_v52  ;;  %v1092_v22 = vmul.f32 %v3453_v2, %v2855_v58  ;;  %v1093_v45 = vmul.f32 %v3455_v28, %v2855_v58  ;;  %v1609_v19 = vadd.f32 %v1577_v40, %v1512_v57 }
 0x19b   : > { %1954 = vst [vmem:[%s3464_s20 + $0x8] sm:$0xff] %v1922_v53  ;;  %1858 = vmatmul.bf16.gmra.mxu3 %v1726_v6  ;;  %v1644_v29 = vadd.f32 %v3311_v38, %v1608_v33  ;;  %v1027_v54 = vadd.f32 %v995_v35, %v930_v17  ;;  %v1189_v36 = vmul.f32 %v2863_v4, %v3219_v44  ;;  %v3515_v15 = vmin.f32 %v1675_v43, 6.0 }
 0x19c   : > { %v1028_v32 = vadd.f32 %v996_v9, %v931_v34  ;;  %v1190_v49 = vmul.f32 %v2863_v4, %v3256_v18  ;;  %v1286_v31 = vmul.f32 %v3472_v20, %v2865_v5  ;;  %v1645_v21 = vadd.f32 %v3311_v38, %v1609_v19 }
 0x19d   : > { %v1676_v24 = vmax.f32 %v1644_v29, 0.0  ;;  %v1124_v13 = vadd.f32 %v1092_v22, %v1027_v54  ;;  %v1287_v44 = vmul.f32 %v3478_v37, %v2865_v5  ;;  %v1384_v50 = vmul.f32 %v2868_v11, %v3511_v12 }
 0x19e   : > { %v1814_v63 = vpop.f32.mrf.mxu1  ;;  %v1125_v60 = vadd.f32 %v1093_v45, %v1028_v32  ;;  %v1385_v26 = vmul.f32 %v2868_v11, %v3513_v8  ;;  %v1677_v14 = vmax.f32 %v1645_v21, 0.0  ;;  %v1481_v40 = vmul.f32 %v2883_v23, %v3273_v59  ;;  %v1353_v21 = vld [vmem:[#allocation2 + $0x207] sm:$0xff] }
 0x19f   : > { %v1815_v16 = vadd.f32 %v3435_v10, %v1814_v63  ;;  %v3533_v6 = vmin.f32 %v1676_v24, 6.0  ;;  %v1221_v61 = vadd.f32 %v1189_v36, %v1124_v13  ;;  %v1482_v47 = vmul.f32 %v2883_v23, %v3327_v30  ;;  %v1354_v24 = vld [vmem:[#allocation2 + $0x20f] sm:$0xff] }
 0x1a0   : > { %v1222_v52 = vadd.f32 %v1190_v49, %v1125_v60  ;;  %v1578_v53 = vmul.f32 %v3314_v62, %v3524_v55  ;;  %v3541_v43 = vmin.f32 %v1677_v14, 6.0  ;;  %v1579_v35 = vmul.f32 %v3314_v62, %v3531_v25  ;;  %v3569_v13 = vld [vmem:[%s2761_s9 + $0x10] sm:$0xff]  }
 0x1a1   : > { %v1923_v7 = vadd.f32 %v1891_v51, %v1815_v16  ;;  %v1318_v56 = vadd.f32 %v1286_v31, %v1221_v61  ;;  %v835_v57 = vmul.f32 %v3453_v2, %v2839_v39  ;;  %v836_v51 = vmul.f32 %v3455_v28, %v2839_v39  ;;  %v1547_v61 = vld [vmem:[#allocation2 + $0x209] sm:$0xff] }
 0x1a2   : > { %v1319_v33 = vadd.f32 %v1287_v44, %v1222_v52  ;;  %v900_v17 = vmul.f32 %v2844_v42, %v867_v1  ;;  %v901_v9 = vmul.f32 %v2844_v42, %v3256_v18  ;;  %v1728_v34 = vpack.c.bf16 %v3541_v43, %v3533_v6 }
 0x1a3   : > { %1955 = vst [vmem:[%s3464_s20 + $0x10] sm:$0xff] %v1923_v7  ;;  %v1416_v22 = vadd.f32 %v1384_v50, %v1318_v56  ;;  %v997_v45 = vmul.f32 %v3472_v20, %v2850_v48  ;;  %v998_v2 = vmul.f32 %v3478_v37, %v2850_v48  ;;  %v1094_v28 = vmul.f32 %v3511_v12, %v2855_v58 }
 0x1a4   : > { %v1417_v19 = vadd.f32 %v1385_v26, %v1319_v33  ;;  %v932_v29 = vadd.f32 %v900_v17, %v835_v57  ;;  %v933_v54 = vadd.f32 %v901_v9, %v836_v51  ;;  %v1727_v18 = vpack.c.bf16 %v3515_v15, %v3502_v46  ;;  %v1548_v33 = vld [vmem:[#allocation2 + $0x211] sm:$0xff] }
 0x1a5   : > { %v1513_v32 = vadd.f32 %v1481_v40, %v1416_v22  ;;  %v1095_v49 = vmul.f32 %v3513_v8, %v2855_v58  ;;  %v1191_v37 = vmul.f32 %v2863_v4, %v3273_v59  ;;  %v1192_v46 = vmul.f32 %v2863_v4, %v3327_v30 }
 0x1a6   : > { %v1816_v36 = vpop.f32.mrf.mxu1  ;;  %v1514_v31 = vadd.f32 %v1482_v47, %v1417_v19  ;;  %v1029_v63 = vadd.f32 %v997_v45, %v932_v29  ;;  %v1030_v16 = vadd.f32 %v998_v2, %v933_v54  ;;  %v1288_v15 = vmul.f32 %v3524_v55, %v2865_v5 }
 0x1a7   : > { %v1817_v20 = vadd.f32 %v3435_v10, %v1816_v36  ;;  %v1610_v44 = vadd.f32 %v1578_v53, %v1513_v32  ;;  %v1289_v14 = vmul.f32 %v3531_v25, %v2865_v5  ;;  %v1386_v7 = vmul.f32 %v2868_v11, %v1353_v21 }
 0x1a8   : > { %v1611_v50 = vadd.f32 %v1579_v35, %v1514_v31  ;;  %v1126_v26 = vadd.f32 %v1094_v28, %v1029_v63  ;;  %v1127_v1 = vadd.f32 %v1095_v49, %v1030_v16  ;;  %v1387_v52 = vmul.f32 %v2868_v11, %v1354_v24 }
 0x1a9   : > { %v1924_v60 = vadd.f32 %v1892_v41, %v1817_v20  ;;  %v1646_v40 = vadd.f32 %v3311_v38, %v1610_v44  ;;  %v1893_v47 = vunpack.c.l.bf16 %v3569_v13  ;;  %v1483_v53 = vmul.f32 %v2883_v23, %v3338_v3 }
 0x1aa   : > { %v1647_v27 = vadd.f32 %v3311_v38, %v1611_v50  ;;  %v1223_v41 = vadd.f32 %v1191_v37, %v1126_v26  ;;  %v1224_v35 = vadd.f32 %v1192_v46, %v1127_v1  ;;  %v1484_v57 = vmul.f32 %v2883_v23, %v3391_v0  ;;  %v1355_v50 = vld [vmem:[#allocation2 + $0x227] sm:$0xff] }
 0x1ab   : > { %1956 = vst [vmem:[%s3464_s20 + $0x18] sm:$0xff] %v1924_v60  ;;  %1863 = vmatmul.bf16.gmra.mxu3 %v1727_v18  ;;  %v1678_v56 = vmax.f32 %v1646_v40, 0.0  ;;  %v1580_v51 = vmul.f32 %v3314_v62, %v1547_v61  ;;  %v837_v22 = vmul.f32 %v3511_v12, %v2839_v39  ;;  %v838_v45 = vmul.f32 %v3513_v8, %v2839_v39 }
 0x1ac   : > { %v1679_v17 = vmax.f32 %v1647_v27, 0.0  ;;  %v1320_v9 = vadd.f32 %v1288_v15, %v1223_v41  ;;  %v1321_v29 = vadd.f32 %v1289_v14, %v1224_v35  ;;  %v902_v54 = vmul.f32 %v2844_v42, %v3273_v59 }
 0x1ad   : > { %v3594_v19 = vmin.f32 %v1678_v56, 6.0  ;;  %v903_v28 = vmul.f32 %v2844_v42, %v3327_v30  ;;  %v1581_v12 = vmul.f32 %v3314_v62, %v1548_v33  ;;  %v999_v20 = vmul.f32 %v3524_v55, %v2850_v48  ;;  %v1550_v56 = vld [vmem:[#allocation2 + $0x231] sm:$0xff] }
 0x1ae   : > { %v1819_v2 = vpop.f32.mrf.mxu1  ;;  %v3601_v18 = vmin.f32 %v1679_v17, 6.0  ;;  %v1418_v32 = vadd.f32 %v1386_v7, %v1320_v9  ;;  %v1419_v49 = vadd.f32 %v1387_v52, %v1321_v29  ;;  %v934_v39 = vadd.f32 %v902_v54, %v837_v22 }
 0x1af   : > { %v1820_v36 = vadd.f32 %v3435_v10, %v1819_v2  ;;  %v935_v8 = vadd.f32 %v903_v28, %v838_v45  ;;  %v1000_v42 = vmul.f32 %v3531_v25, %v2850_v48  ;;  %v1096_v44 = vmul.f32 %v1353_v21, %v2855_v58  ;;  %v1356_v25 = vld [vmem:[#allocation2 + $0x22f] sm:$0xff] }
 0x1b0   : > { %v1729_v59 = vpack.c.bf16 %v3601_v18, %v3594_v19  ;;  %v1515_v63 = vadd.f32 %v1483_v53, %v1418_v32  ;;  %v1516_v30 = vadd.f32 %v1484_v57, %v1419_v49  ;;  %v1031_v37 = vadd.f32 %v999_v20, %v934_v39  ;;  %v2392_v53 = vld [vmem:[#allocation2] sm:$0xff] }
 0x1b1   : > { %v1925_v31 = vadd.f32 %v1893_v47, %v1820_v36  ;;  %v1097_v16 = vmul.f32 %v1354_v24, %v2855_v58  ;;  %v1032_v15 = vadd.f32 %v1000_v42, %v935_v8  ;;  %v1193_v55 = vmul.f32 %v2863_v4, %v3338_v3 }
 0x1b2   : > { %v1612_v46 = vadd.f32 %v1580_v51, %v1515_v63  ;;  %v1194_v60 = vmul.f32 %v2863_v4, %v3391_v0  ;;  %v1613_v26 = vadd.f32 %v1581_v12, %v1516_v30  ;;  %v1128_v14 = vadd.f32 %v1096_v44, %v1031_v37  ;;  %v355_v51 = vld [vmem:[%s2761_s9 + $0x18] sm:$0xff]   ;;  %v357_v37 = vld [vmem:[%s2761_s9 + $0x20] sm:$0xff]  }
 0x1b3   : > { %1957 = vst [vmem:[%s3464_s20 + $0x20] sm:$0xff] %v1925_v31  ;;  %v1290_v48 = vmul.f32 %v1547_v61, %v2865_v5  ;;  %v1894_v40 = vunpack.c.h.bf16 %v3569_v13  ;;  %v1129_v58 = vadd.f32 %v1097_v16, %v1032_v15  ;;  %v1291_v24 = vmul.f32 %v1548_v33, %v2865_v5  ;;  %v1549_v13 = vld [vmem:[#allocation2 + $0x229] sm:$0xff] }
 0x1b4   : > { %v1648_v21 = vadd.f32 %v3311_v38, %v1612_v46  ;;  %v1649_v7 = vadd.f32 %v3311_v38, %v1613_v26  ;;  %v1225_v3 = vadd.f32 %v1193_v55, %v1128_v14  ;;  %v1388_v4 = vmul.f32 %v2868_v11, %v1355_v50  ;;  %v359_v26 = vld [vmem:[%s2761_s9 + $0x28] sm:$0xff]  }
 0x1b5   : > { %v1226_v61 = vadd.f32 %v1194_v60, %v1129_v58  ;;  %v1389_v47 = vmul.f32 %v2868_v11, %v1356_v25  ;;  %v1485_v5 = vmul.f32 %v2392_v53, %v2883_v23  ;;  %v1582_v22 = vmul.f32 %v3314_v62, %v1549_v13  ;;  %v361_v58 = vld [vmem:[%s2761_s9 + $0x30] sm:$0xff]   ;;  %v365_v13 = vld [vmem:[%s2761_s9 + $0x40] sm:$0xff]  }
 0x1b6   : > { %v1821_v1 = vpop.f32.mrf.mxu1  ;;  %v1680_v52 = vmax.f32 %v1648_v21, 0.0  ;;  %v1681_v27 = vmax.f32 %v1649_v7, 0.0  ;;  %v1322_v41 = vadd.f32 %v1290_v48, %v1225_v3  ;;  %v1583_v45 = vmul.f32 %v3314_v62, %v1550_v56 }
 0x1b7   : > { %v1822_v0 = vadd.f32 %v3435_v10, %v1821_v1  ;;  %v1323_v33 = vadd.f32 %v1291_v24, %v1226_v61  ;;  %v1895_v29 = vunpack.c.l.bf16 %v355_v51  ;;  %v1896_v8 = vunpack.c.h.bf16 %v355_v51 }
 0x1b8   : > { %v1712_v57 = vmin.f32 %v1680_v52, 6.0  ;;  %v1713_v17 = vmin.f32 %v1681_v27, 6.0  ;;  %v1420_v9 = vadd.f32 %v1388_v4, %v1322_v41  ;;  %v1898_v15 = vunpack.c.h.bf16 %v357_v37 }
 0x1b9   : > { %v1926_v35 = vadd.f32 %v1894_v40, %v1822_v0  ;;  %v1421_v11 = vadd.f32 %v1389_v47, %v1323_v33  ;;  %v1899_v14 = vunpack.c.l.bf16 %v359_v26  ;;  %v1900_v48 = vunpack.c.h.bf16 %v359_v26  ;;  %v363_v47 = vld [vmem:[%s2761_s9 + $0x38] sm:$0xff]   ;;  %v373_v26 = vld [vmem:[%s2761_s9 + $0x60] sm:$0xff]  }
 0x1ba   : > { %v1730_v2 = vpack.c.bf16 %v1713_v17, %v1712_v57  ;;  %v1517_v23 = vadd.f32 %v1485_v5, %v1420_v9  ;;  %v1901_v24 = vunpack.c.l.bf16 %v361_v58  ;;  %v1902_v4 = vunpack.c.h.bf16 %v361_v58  ;;  %v375_v58 = vld [vmem:[%s2761_s9 + $0x68] sm:$0xff]  }
 0x1bb   : > { %1958 = vst [vmem:[%s3464_s20 + $0x28] sm:$0xff] %v1926_v35  ;;  %1868 = vmatmul.bf16.gmra.mxu3 %v1728_v34  ;;  %v1518_v54 = vadd.f32 %v1485_v5, %v1421_v11  ;;  %v1903_v27 = vunpack.c.l.bf16 %v363_v47  ;;  %v1905_v41 = vunpack.c.l.bf16 %v365_v13  ;;  %v1904_v51 = vunpack.c.h.bf16 %v363_v47  ;;  %v377_v47 = vld [vmem:[%s2761_s9 + $0x70] sm:$0xff]  }
 0x1bc   : > { %v1614_v36 = vadd.f32 %v1582_v22, %v1517_v23  ;;  %v1906_v17 = vunpack.c.h.bf16 %v365_v13  ;;  %v1917_v13 = vunpack.c.l.bf16 %v377_v47 }
 0x1bd   : > { %v1615_v12 = vadd.f32 %v1583_v45, %v1518_v54 }
 0x1be   : > { %v1824_v28 = vpop.f32.mrf.mxu1  ;;  %v1650_v49 = vadd.f32 %v3311_v38, %v1614_v36 }
 0x1bf   : > { %v1825_v32 = vadd.f32 %v3435_v10, %v1824_v28  ;;  %v1651_v6 = vadd.f32 %v3311_v38, %v1615_v12  ;;  %v1897_v38 = vunpack.c.l.bf16 %v357_v37  ;;  %v371_v37 = vld [vmem:[%s2761_s9 + $0x58] sm:$0xff]  }
 0x1c0   : > { %v1682_v43 = vmax.f32 %v1650_v49, 0.0 }
 0x1c1   : > { %v1927_v39 = vadd.f32 %v1895_v29, %v1825_v32  ;;  %v1683_v62 = vmax.f32 %v1651_v6, 0.0  ;;  %v367_v29 = vld [vmem:[%s2761_s9 + $0x48] sm:$0xff]  }
 0x1c2   : > { %v1714_v34 = vmin.f32 %v1682_v43, 6.0  ;;  %v1907_v54 = vunpack.c.l.bf16 %v367_v29  ;;  %v1908_v12 = vunpack.c.h.bf16 %v367_v29  ;;  %v369_v43 = vld [vmem:[%s2761_s9 + $0x50] sm:$0xff]  }
 0x1c3   : > { %1959 = vst [vmem:[%s3464_s20 + $0x30] sm:$0xff] %v1927_v39  ;;  %v1715_v20 = vmin.f32 %v1683_v62, 6.0  ;;  %v1909_v62 = vunpack.c.l.bf16 %v369_v43 }
 0x1c5   : > { %v1731_v42 = vpack.c.bf16 %v1715_v20, %v1714_v34 }
 0x1c6   : > { %v1826_v31 = vpop.f32.mrf.mxu1 }
 0x1c7   : > { %v1827_v63 = vadd.f32 %v3435_v10, %v1826_v31  ;;  %v1910_v31 = vunpack.c.h.bf16 %v369_v43 }
 0x1c9   : > { %v1928_v30 = vadd.f32 %v1896_v8, %v1827_v63 }
 0x1cb   : > { %1960 = vst [vmem:[%s3464_s20 + $0x38] sm:$0xff] %v1928_v30  ;;  %1873 = vmatmul.bf16.gmra.mxu3 %v1729_v59 }
 0x1ce   : > { %v1829_v44 = vpop.f32.mrf.mxu1 }
 0x1cf   : > { %v1830_v16 = vadd.f32 %v3435_v10, %v1829_v44 }
 0x1d1   : > { %v1929_v46 = vadd.f32 %v1897_v38, %v1830_v16  ;;  %v1911_v38 = vunpack.c.l.bf16 %v371_v37 }
 0x1d3   : > { %1961 = vst [vmem:[%s3464_s20 + $0x40] sm:$0xff] %v1929_v46 }
 0x1d6   : > { %v1831_v55 = vpop.f32.mrf.mxu1 }
 0x1d7   : > { %v1832_v60 = vadd.f32 %v3435_v10, %v1831_v55 }
 0x1d9   : > { %v1930_v50 = vadd.f32 %v1898_v15, %v1832_v60  ;;  %v1912_v15 = vunpack.c.h.bf16 %v371_v37 }
 0x1db   : > { %1962 = vst [vmem:[%s3464_s20 + $0x48] sm:$0xff] %v1930_v50  ;;  %1878 = vmatmul.bf16.gmra.mxu3 %v1730_v2 }
 0x1de   : > { %v1834_v19 = vpop.f32.mrf.mxu1 }
 0x1df   : > { %v1835_v18 = vadd.f32 %v3435_v10, %v1834_v19 }
 0x1e1   : > { %v1931_v59 = vadd.f32 %v1899_v14, %v1835_v18  ;;  %v1913_v14 = vunpack.c.l.bf16 %v373_v26 }
 0x1e3   : > { %1963 = vst [vmem:[%s3464_s20 + $0x50] sm:$0xff] %v1931_v59 }
 0x1e6   : > { %v1836_v25 = vpop.f32.mrf.mxu1 }
 0x1e7   : > { %v1837_v40 = vadd.f32 %v3435_v10, %v1836_v25 }
 0x1e9   : > { %v1932_v21 = vadd.f32 %v1900_v48, %v1837_v40  ;;  %v1914_v48 = vunpack.c.h.bf16 %v373_v26 }
 0x1eb   : > { %1964 = vst [vmem:[%s3464_s20 + $0x58] sm:$0xff] %v1932_v21  ;;  %1883 = vmatmul.bf16.gmra.mxu3 %v1731_v42 }
 0x1ee   : > { %v1839_v1 = vpop.f32.mrf.mxu1 }
 0x1ef   : > { %v1840_v7 = vadd.f32 %v3435_v10, %v1839_v1 }
 0x1f1   : > { %v1933_v3 = vadd.f32 %v1901_v24, %v1840_v7  ;;  %v1915_v24 = vunpack.c.l.bf16 %v375_v58 }
 0x1f3   : > { %1965 = vst [vmem:[%s3464_s20 + $0x60] sm:$0xff] %v1933_v3 }
 0x1f6   : > { %v1841_v0 = vpop.f32.mrf.mxu1 }
 0x1f7   : > { %v1842_v52 = vadd.f32 %v3435_v10, %v1841_v0 }
 0x1f9   : > { %v1934_v61 = vadd.f32 %v1902_v4, %v1842_v52  ;;  %v1916_v4 = vunpack.c.h.bf16 %v375_v58 }
 0x1fb   : > { %1966 = vst [vmem:[%s3464_s20 + $0x68] sm:$0xff] %v1934_v61 }
 0x1fe   : > { %v1844_v53 = vpop.f32.mrf.mxu1  ;;  %v1849_v5 = vpop.f32.mrf.mxu3 }
 0x1ff   : > { %v1845_v56 = vadd.f32 %v3435_v10, %v1844_v53  ;;  %v1850_v35 = vadd.f32 %v3435_v10, %v1849_v5  ;;  %v1918_v5 = vunpack.c.h.bf16 %v377_v47 }
 0x201   : > { %v1935_v57 = vadd.f32 %v1903_v27, %v1845_v56  ;;  %v1937_v33 = vadd.f32 %v1905_v41, %v1850_v35 }
 0x203   : > { %1967 = vst [vmem:[%s3464_s20 + $0x70] sm:$0xff] %v1935_v57 }
 0x204   : > { %1969 = vst [vmem:[%s3464_s20 + $0x80] sm:$0xff] %v1937_v33  ;;  %v379_v33 = vld [vmem:[%s2761_s9 + $0x78] sm:$0xff]   ;;  %s1986_s9 = scalar_lea.sflag [#allocation5], %s2757_s23 }
 0x206   : > { %v1846_v9 = vpop.f32.mrf.mxu1  ;;  %v1851_v22 = vpop.f32.mrf.mxu3 }
 0x207   : > { %v1847_v11 = vadd.f32 %v3435_v10, %v1846_v9  ;;  %v1852_v45 = vadd.f32 %v3435_v10, %v1851_v22 }
 0x209   : > { %v1936_v2 = vadd.f32 %v1904_v51, %v1847_v11  ;;  %v1938_v23 = vadd.f32 %v1906_v17, %v1852_v45  ;;  %v1919_v51 = vunpack.c.l.bf16 %v379_v33  ;;  %v1920_v11 = vunpack.c.h.bf16 %v379_v33 }
 0x20b   : > { %1968 = vst [vmem:[%s3464_s20 + $0x78] sm:$0xff] %v1936_v2 }
 0x20c   : > { %1970 = vst [vmem:[%s3464_s20 + $0x88] sm:$0xff] %v1938_v23 }
 0x20e   : > { %v1854_v28 = vpop.f32.mrf.mxu3 }
 0x20f   : > { %v1855_v36 = vadd.f32 %v3435_v10, %v1854_v28 }
 0x211   : > { %v1939_v32 = vadd.f32 %v1907_v54, %v1855_v36 }
 0x213   : > { %1971 = vst [vmem:[%s3464_s20 + $0x90] sm:$0xff] %v1939_v32 }
 0x216   : > { %v1856_v49 = vpop.f32.mrf.mxu3 }
 0x217   : > { %v1857_v39 = vadd.f32 %v3435_v10, %v1856_v49 }
 0x219   : > { %v1940_v6 = vadd.f32 %v1908_v12, %v1857_v39 }
 0x21b   : > { %1972 = vst [vmem:[%s3464_s20 + $0x98] sm:$0xff] %v1940_v6 }
 0x21e   : > { %v1859_v34 = vpop.f32.mrf.mxu3 }
 0x21f   : > { %v1860_v8 = vadd.f32 %v3435_v10, %v1859_v34 }
 0x221   : > { %v1941_v20 = vadd.f32 %v1909_v62, %v1860_v8 }
 0x223   : > { %1973 = vst [vmem:[%s3464_s20 + $0xa0] sm:$0xff] %v1941_v20 }
 0x226   : > { %v1861_v63 = vpop.f32.mrf.mxu3 }
 0x227   : > { %v1862_v42 = vadd.f32 %v3435_v10, %v1861_v63 }
 0x229   : > { %v1942_v30 = vadd.f32 %v1910_v31, %v1862_v42 }
 0x22b   : > { %1974 = vst [vmem:[%s3464_s20 + $0xa8] sm:$0xff] %v1942_v30 }
 0x22e   : > { %v1864_v44 = vpop.f32.mrf.mxu3 }
 0x22f   : > { %v1865_v16 = vadd.f32 %v3435_v10, %v1864_v44 }
 0x231   : > { %v1943_v46 = vadd.f32 %v1911_v38, %v1865_v16 }
 0x233   : > { %1975 = vst [vmem:[%s3464_s20 + $0xb0] sm:$0xff] %v1943_v46 }
 0x236   : > { %v1866_v55 = vpop.f32.mrf.mxu3 }
 0x237   : > { %v1867_v60 = vadd.f32 %v3435_v10, %v1866_v55 }
 0x239   : > { %v1944_v50 = vadd.f32 %v1912_v15, %v1867_v60 }
 0x23b   : > { %1976 = vst [vmem:[%s3464_s20 + $0xb8] sm:$0xff] %v1944_v50 }
 0x23e   : > { %v1869_v19 = vpop.f32.mrf.mxu3 }
 0x23f   : > { %v1870_v18 = vadd.f32 %v3435_v10, %v1869_v19 }
 0x241   : > { %v1945_v59 = vadd.f32 %v1913_v14, %v1870_v18 }
 0x243   : > { %1977 = vst [vmem:[%s3464_s20 + $0xc0] sm:$0xff] %v1945_v59 }
 0x246   : > { %v1871_v25 = vpop.f32.mrf.mxu3 }
 0x247   : > { %v1872_v40 = vadd.f32 %v3435_v10, %v1871_v25 }
 0x249   : > { %v1946_v21 = vadd.f32 %v1914_v48, %v1872_v40 }
 0x24b   : > { %1978 = vst [vmem:[%s3464_s20 + $0xc8] sm:$0xff] %v1946_v21 }
 0x24e   : > { %v1874_v1 = vpop.f32.mrf.mxu3 }
 0x24f   : > { %v1875_v7 = vadd.f32 %v3435_v10, %v1874_v1 }
 0x251   : > { %v1947_v3 = vadd.f32 %v1915_v24, %v1875_v7 }
 0x253   : > { %1979 = vst [vmem:[%s3464_s20 + $0xd0] sm:$0xff] %v1947_v3 }
 0x256   : > { %v1876_v0 = vpop.f32.mrf.mxu3 }
 0x257   : > { %v1877_v52 = vadd.f32 %v3435_v10, %v1876_v0 }
 0x259   : > { %v1948_v61 = vadd.f32 %v1916_v4, %v1877_v52 }
 0x25b   : > { %1980 = vst [vmem:[%s3464_s20 + $0xd8] sm:$0xff] %v1948_v61 }
 0x25e   : > { %v1879_v27 = vpop.f32.mrf.mxu3 }
 0x25f   : > { %v1880_v41 = vadd.f32 %v3435_v10, %v1879_v27 }
 0x261   : > { %v1949_v53 = vadd.f32 %v1917_v13, %v1880_v41 }
 0x263   : > { %1981 = vst [vmem:[%s3464_s20 + $0xe0] sm:$0xff] %v1949_v53 }
 0x266   : > { %v1881_v56 = vpop.f32.mrf.mxu3 }
 0x267   : > { %v1882_v35 = vadd.f32 %v3435_v10, %v1881_v56 }
 0x269   : > { %v1950_v57 = vadd.f32 %v1918_v5, %v1882_v35 }
 0x26b   : > { %1982 = vst [vmem:[%s3464_s20 + $0xe8] sm:$0xff] %v1950_v57 }
 0x26e   : > { %v1884_v17 = vpop.f32.mrf.mxu3 }
 0x26f   : > { %v1885_v9 = vadd.f32 %v3435_v10, %v1884_v17 }
 0x271   : > { %v1951_v22 = vadd.f32 %v1919_v51, %v1885_v9 }
 0x273   : > { %1983 = vst [vmem:[%s3464_s20 + $0xf0] sm:$0xff] %v1951_v22 }
 0x276   : > { %v1886_v45 = vpop.f32.mrf.mxu3 }
 0x277   : > { %v1887_v2 = vadd.f32 %v3435_v10, %v1886_v45 }
 0x279   : > { %v1952_v23 = vadd.f32 %v1920_v11, %v1887_v2 }
 0x27b   : > { %1984 = vst [vmem:[%s3464_s20 + $0xf8] sm:$0xff] %v1952_v23 }
 0x27c   : > { %2540 = shalt.err (!%p2537_p10)
}
 0x27d   : > { %s2597_s23 = smov 128   ;;  %s2598_s20 = smov 8  }
 0x27e   : > { %2315 = dma.vmem_to_hbm [thread:$0]  (%p2727_p3), %s1999_s11, 4096, %s2001_s17, %s1986_s9, %s2597_s23, %s2597_s23, %s2598_s20  }
 0x27f PF: > { %s2015_s1 = sand.u32 1, %s2575_s24   ;;  %p3800_p12 = scmp.ge.s32.totalorder %s2587_s27, 2 }
 0x280   : > { %s2016_s30 = scalar_lea.sflag [#allocation5], %s2015_s1 }
 0x281   : > { %p2332_p13 = pnand %p3800_p12, %p2674_p6 }
 0x283   : > { %p2333_p0 = pneg %p2332_p13 }
 0x285   : > { %2570 = dma.done.wait (%p2333_p0), %s2016_s30, 4096  }
 0x286   : > { %2572 = vsyncadd (%p2333_p0), %s2016_s30, 4294963200  ;;  %p22_p5 = scmp.ge.s32.totalorder %s2714_s16, 4   ;;  %s3801_s24 = smov %s2579_s25 }
 0x287   : > { %s3802_s25 = smov %s2583_s26  ;;  %s3803_s26 = smov %s2723_s21 }
 0x288   : > { %s3804_s27 = smov %s2714_s16  ;;  %24 = sbr.rel (!%p22_p5) target bundleno = 9 (0x9), region = 108 }
 0x28d   :  { %2022 = vsyncpa [#allocation4], 1 }
 0x28e   :  { %2024 = vsyncpa [#allocation4 + $0x1], 1 }
 0x28f   :  { %2025 = vsyncpa [#allocation7], 1 }
 0x290   :  { %2026 = vsyncpa [#allocation10], 1 }
 0x291   :  { %2027 = vsyncpa [#allocation5], 1 }
 0x292   :  { %2029 = vsyncpa [#allocation5 + $0x1], 1 }

</bundles_post_ra>
